<compile_context>
chip_gen: v7x
topology: tpu7x:2x2x1
jax: 0.10.0
libtpu: 0.0.40
codegen_flags: <defaults>
</compile_context>

<pallas_src>
import functools

import jax
import jax.numpy as jnp
from jax import lax
from jax.experimental import pallas as pl
from jax.experimental.pallas import tpu as pltpu

LANE = 128
SUBLANE = 8


def _round_up(x, m):
    return (x + m - 1) // m * m


def repvgg_kernel(x_hbm, w_ref, b_ref, o_ref, xbuf, sem):
    # x_hbm: (N, Hp+2, Win, Cin_p)        bf16 zero-padded input, in HBM (pl.ANY)
    # w_ref: (3, 3*Cin_p, Cout_p)         bf16 BN-folded + 1x1-reparam'd weights
    # b_ref: (1, Cout_p)                  f32 combined bias
    # o_ref: (1, TH, Wp, Cout_p)          bf16 output strip (lane-dense Cout)
    # xbuf : (n_slots, THS+2, Win, Cin_p) bf16 VMEM sub-strip buffers (+2-row halo)
    # sem  : (n_slots,)                   DMA semaphores
    n = pl.program_id(0)
    i = pl.program_id(1)
    TH = o_ref.shape[1]
    Wp = o_ref.shape[2]
    Cout = o_ref.shape[3]
    K3 = w_ref.shape[1]                 # 3 * Cin_p
    n_slots = xbuf.shape[0]
    THS = xbuf.shape[1] - 2             # sub-strip height
    n_sub = TH // THS

    base = pl.multiple_of(i * TH, TH)   # strip base row (TH is a mult. of 8 here)

    def fetch(j, slot):
        row0 = base + j * THS
        pltpu.make_async_copy(
            x_hbm.at[n, pl.ds(row0, THS + 2), :, :], xbuf.at[slot], sem.at[slot]
        ).start()

    def wait(slot):
        pltpu.make_async_copy(
            x_hbm.at[n, pl.ds(0, THS + 2), :, :], xbuf.at[slot], sem.at[slot]
        ).wait()

    fetch(0, 0)                         # prime slot 0
    bias = b_ref[...]                   # (1, Cout_p) f32

    for j in range(n_sub):              # static, small (1-4)
        slot = j % n_slots
        if j + 1 < n_sub:               # prefetch next sub-strip while computing
            fetch(j + 1, (j + 1) % n_slots)
        wait(slot)

        # bf16 im2col along W only (dy stays on the major axis): (THS+2, Wp, 3*Cin_p)
        x0 = xbuf[slot, :, 0:Wp, :]
        x1 = xbuf[slot, :, 1:1 + Wp, :]
        x2 = xbuf[slot, :, 2:2 + Wp, :]
        cat = jnp.concatenate([x0, x1, x2], axis=-1)

        acc = jnp.zeros((THS * Wp, Cout), jnp.float32)
        for dy in range(3):             # 3 fat MXU matmuls, K = 3*Cin_p
            a = cat[dy:dy + THS].reshape(THS * Wp, K3)
            acc = acc + jnp.dot(a, w_ref[dy], preferred_element_type=jnp.float32)

        y = jnp.maximum(acc + bias, 0.0)            # bias + ReLU
        o_ref[0, j * THS:(j + 1) * THS] = (
            y.reshape(THS, Wp, Cout).astype(o_ref.dtype))


def _fold_bn(w_oihw, gamma, beta, mean, var, eps=1e-5):
    """Fold inference-mode BatchNorm into conv weight (HWIO) + bias."""
    std = jnp.sqrt(var + eps)
    scale = gamma / std
    w = w_oihw * scale[:, None, None, None]
    b = beta - mean * scale
    return jnp.transpose(w, (2, 3, 1, 0)), b


def _reparam(params):
    """RepVGG reparam (alpha=False) -> (3,3,Cin,Cout) HWIO kernel + (Cout,) bias."""
    w3, b3 = _fold_bn(params['w3'], params['g3'], params['be3'],
                      params['m3'], params['v3'])
    w1, b1 = _fold_bn(params['w1'], params['g1'], params['be1'],
                      params['m1'], params['v1'])
    w = w3.at[1, 1].add(w1[0, 0])       # fold 1x1 into the centre 3x3 tap
    b = b3 + b1
    return w, b


@functools.partial(jax.jit, static_argnames=('block_h', 'n_sub'))
def repvgg_forward(x_nchw, params, block_h=32, n_sub=2):
    """RepVggBlock forward (alpha=False): relu(conv3x3_bn(x) + conv1x1_bn(x))."""
    assert block_h % n_sub == 0
    N, Cin, H, W = x_nchw.shape
    w_hwio, bias = _reparam(params)
    Cout = w_hwio.shape[-1]

    # Padded sizes: channels to lane width, W to a sublane multiple, H to the
    # strip height.  Extra rows/cols/channels are zero and sliced off at the end.
    Cin_p = _round_up(Cin, LANE)
    Cout_p = _round_up(Cout, LANE)
    Wp = _round_up(W, SUBLANE)
    Win = Wp + SUBLANE                  # padded input width (>= Wp+2, mult of 8)
    assert Win >= Wp + 2                # halo columns must exist for the dx slices
    TH = min(block_h, _round_up(H, n_sub))
    assert TH % n_sub == 0
    THS = TH // n_sub
    Hp = _round_up(H, TH)
    n_slots = min(2, n_sub)

    # NCHW -> NHWC (channels on the lane axis) + zero pad (halo + alignment).
    x_nhwc = jnp.transpose(x_nchw, (0, 2, 3, 1))
    x_pad = jnp.pad(
        x_nhwc,
        ((0, 0), (1, Hp - H + 1), (1, Win - (W + 1)), (0, Cin_p - Cin)),
    ).astype(jnp.bfloat16)              # (N, Hp+2, Win, Cin_p)

    # (3,3,Cin_p,Cout_p) -> (3, 3*Cin_p, Cout_p); row order (dx, cin) matches the
    # lane-concat order built inside the kernel.
    w_p = jnp.pad(w_hwio, ((0, 0), (0, 0), (0, Cin_p - Cin), (0, Cout_p - Cout)))
    w_packed = w_p.reshape(3, 3 * Cin_p, Cout_p).astype(jnp.bfloat16)
    bias_p = jnp.pad(bias, (0, Cout_p - Cout)).reshape(1, Cout_p).astype(jnp.float32)

    # Rough in-kernel VMEM footprint (bytes) -> explicit scoped-VMEM request.
    vmem_bytes = (
        n_slots * (THS + 2) * Win * Cin_p * 2        # input sub-strip buffers
        + 2 * 3 * 3 * Cin_p * Cout_p * 2             # weights (double buffered)
        + 2 * TH * Wp * Cout_p * 2                   # output block (double buffered)
        + (THS + 2) * Wp * 3 * Cin_p * 2             # im2col temporary
        + 2 * THS * Wp * Cout_p * 4                  # acc / y temporaries
    )
    vmem_limit = int(min(96 * 1024 * 1024, max(32 * 1024 * 1024, 2 * vmem_bytes)))

    cost = pl.CostEstimate(
        flops=2 * N * Hp * Wp * 9 * Cin_p * Cout_p,
        transcendentals=0,
        bytes_accessed=(N * (Hp + 2) * Win * Cin_p * 2
                        + 3 * 3 * Cin_p * Cout_p * 2
                        + N * Hp * Wp * Cout_p * 2),
    )

    out = pl.pallas_call(
        repvgg_kernel,
        out_shape=jax.ShapeDtypeStruct((N, Hp, Wp, Cout_p), jnp.bfloat16),
        grid_spec=pltpu.PrefetchScalarGridSpec(
            num_scalar_prefetch=0,
            grid=(N, Hp // TH),
            in_specs=[
                pl.BlockSpec(memory_space=pl.ANY),            # x stays in HBM
                pl.BlockSpec((3, 3 * Cin_p, Cout_p), lambda n, i: (0, 0, 0)),
                pl.BlockSpec((1, Cout_p), lambda n, i: (0, 0)),
            ],
            out_specs=pl.BlockSpec((1, TH, Wp, Cout_p),
                                   lambda n, i: (n, i, 0, 0)),
            scratch_shapes=[
                pltpu.VMEM((n_slots, THS + 2, Win, Cin_p), jnp.bfloat16),
                pltpu.SemaphoreType.DMA((n_slots,)),
            ],
        ),
        compiler_params=pltpu.CompilerParams(
            dimension_semantics=("parallel", "parallel"),
            vmem_limit_bytes=vmem_limit),
        cost_estimate=cost,
    )(x_pad, w_packed, bias_p)

    y = out[:, :H, :W, :Cout]
    # Back to NCHW + f32 to match the PyTorch module's output (one fused pass).
    return jnp.transpose(y, (0, 3, 1, 2)).astype(jnp.float32)


# ----------------------------- references -----------------------------------

def _bn_nchw(y, g, b, m, v, eps=1e-5):
    s = (g / jnp.sqrt(v + eps))[None, :, None, None]
    return (y - m[None, :, None, None]) * s + b[None, :, None, None]


def repvgg_reference_fp32(x_nchw, p):
    """Exact two-branch fp32 reference of the original module (no reparam)."""
    y3 = lax.conv_general_dilated(x_nchw, p['w3'], (1, 1), ((1, 1), (1, 1)),
                                  dimension_numbers=('NCHW', 'OIHW', 'NCHW'))
    y1 = lax.conv_general_dilated(x_nchw, p['w1'], (1, 1), ((0, 0), (0, 0)),
                                  dimension_numbers=('NCHW', 'OIHW', 'NCHW'))
    y = (_bn_nchw(y3, p['g3'], p['be3'], p['m3'], p['v3'])
         + _bn_nchw(y1, p['g1'], p['be1'], p['m1'], p['v1']))
    return jnp.maximum(y, 0.0)


def repvgg_reference_bf16(x_nchw, params):
    """Reparameterized reference using the same bf16 operands / f32 accumulation."""
    w_hwio, bias = _reparam(params)
    x_nhwc = jnp.transpose(x_nchw, (0, 2, 3, 1))
    y = lax.conv_general_dilated(
        x_nhwc.astype(jnp.bfloat16), w_hwio.astype(jnp.bfloat16),
        window_strides=(1, 1), padding='SAME',
        dimension_numbers=('NHWC', 'HWIO', 'NHWC'),
        preferred_element_type=jnp.float32) + bias
    y = jnp.maximum(y, 0.0)
    return jnp.transpose(y, (0, 3, 1, 2))


if __name__ == "__main__":
    key = jax.random.PRNGKey(0)
    N, Cin, Cout, H, W = 2, 4, 4, 16, 16

    ks = jax.random.split(key, 11)
    params = {
        # conv1: 3x3, no bias ; BN params
        'w3': 0.1 * jax.random.normal(ks[0], (Cout, Cin, 3, 3), jnp.float32),
        'g3': 1.0 + 0.1 * jax.random.normal(ks[1], (Cout,), jnp.float32),
        'be3': 0.1 * jax.random.normal(ks[2], (Cout,), jnp.float32),
        'm3': 0.1 * jax.random.normal(ks[3], (Cout,), jnp.float32),
        'v3': jnp.abs(jax.random.normal(ks[4], (Cout,), jnp.float32)) + 0.5,
        # conv2: 1x1, no bias ; BN params
        'w1': 0.1 * jax.random.normal(ks[5], (Cout, Cin, 1, 1), jnp.float32),
        'g1': 1.0 + 0.1 * jax.random.normal(ks[6], (Cout,), jnp.float32),
        'be1': 0.1 * jax.random.normal(ks[7], (Cout,), jnp.float32),
        'm1': 0.1 * jax.random.normal(ks[8], (Cout,), jnp.float32),
        'v1': jnp.abs(jax.random.normal(ks[9], (Cout,), jnp.float32)) + 0.5,
    }

    x = jax.random.normal(ks[10], (N, Cin, H, W), jnp.float32)   # NCHW input

    y_fp32 = jax.block_until_ready(repvgg_reference_fp32(x, params))
    y_bf16 = jax.block_until_ready(repvgg_reference_bf16(x, params))

    # Config A: one strip per image, 2 double-buffered sub-strips (DMA overlap).
    # Config B: two strips per image, single sub-strip (multi-strip grid axis).
    for bh, ns in ((16, 2), (8, 1)):
        y = jax.block_until_ready(repvgg_forward(x, params, block_h=bh, n_sub=ns))
        assert y.shape == (N, Cout, H, W)
        err_b = float(jnp.max(jnp.abs(y - y_bf16)))
        err_f = float(jnp.max(jnp.abs(y - y_fp32)))
        assert jnp.allclose(y, y_bf16, atol=2e-2, rtol=2e-2), (bh, ns, err_b)
        assert jnp.allclose(y, y_fp32, atol=5e-2, rtol=5e-2), (bh, ns, err_f)

    print("KERNEL_OK")
</pallas_src>

<mosaic_0001>
module attributes {stable_mosaic.version = 11 : i64} {
  func.func @repvgg_kernel(%arg0: i32, %arg1: i32, %arg2: memref<2x18x24x128xbf16, #tpu.memory_space<any>>, %arg3: memref<3x384x128xbf16, #tpu.memory_space<vmem>>, %arg4: memref<1x128xf32, #tpu.memory_space<vmem>>, %arg5: memref<1x16x16x128xbf16, #tpu.memory_space<vmem>>, %arg6: memref<2x10x24x128xbf16, #tpu.memory_space<vmem>>, %arg7: memref<2x!tpu.dma_semaphore, #tpu.memory_space<semaphore_mem>>) attributes {dimension_semantics = [#tpu.dimension_semantics<parallel>, #tpu.dimension_semantics<parallel>], iteration_bounds = array<i64: 2, 1>, scalar_prefetch = 0 : i64, scratch_operands = 2 : i64, tpu.core_type = #tpu.core_type<tc>, window_params = [{}, {pipeline_mode = #tpu.pipeline_mode<synchronous>, transform_indices = @transform_1, window_bounds = array<i64: 3, 384, 128>}, {pipeline_mode = #tpu.pipeline_mode<synchronous>, transform_indices = @transform_2, window_bounds = array<i64: 1, 128>}, {transform_indices = @transform_3, window_bounds = array<i64: 1, 16, 16, 128>}]} {
    %c16_i32 = arith.constant 16 : i32
    %0 = arith.muli %arg1, %c16_i32 : i32
    %1 = tpu.assume_multiple %0, 16 : i32
    %c0_i32 = arith.constant 0 : i32
    %2 = arith.addi %1, %c0_i32 : i32
    %c0_i32_0 = arith.constant 0 : i32
    %c0_i32_1 = arith.constant 0 : i32
    %c0_i32_2 = arith.constant 0 : i32
    %c0_i32_3 = arith.constant 0 : i32
    %3 = tpu.memref_slice %arg2[%arg0, %2, %c0_i32_2, %c0_i32_3] : memref<2x18x24x128xbf16, #tpu.memory_space<any>> -> memref<1x10x24x128xbf16, #tpu.memory_space<any>>
    %4 = tpu.memref_squeeze %3 : memref<1x10x24x128xbf16, #tpu.memory_space<any>> -> memref<10x24x128xbf16, #tpu.memory_space<any>>
    %c0_i32_4 = arith.constant 0 : i32
    %c0_i32_5 = arith.constant 0 : i32
    %c0_i32_6 = arith.constant 0 : i32
    %5 = tpu.memref_slice %arg6[%c0_i32_0, %c0_i32_4, %c0_i32_5, %c0_i32_6] : memref<2x10x24x128xbf16, #tpu.memory_space<vmem>> -> memref<1x10x24x128xbf16, #tpu.memory_space<vmem>>
    %6 = tpu.memref_squeeze %5 : memref<1x10x24x128xbf16, #tpu.memory_space<vmem>> -> memref<10x24x128xbf16, #tpu.memory_space<vmem>>
    %7 = tpu.memref_slice %arg7[%c0_i32_1] : memref<2x!tpu.dma_semaphore, #tpu.memory_space<semaphore_mem>> -> memref<1x!tpu.dma_semaphore, #tpu.memory_space<semaphore_mem>>
    %8 = tpu.memref_squeeze %7 : memref<1x!tpu.dma_semaphore, #tpu.memory_space<semaphore_mem>> -> memref<!tpu.dma_semaphore, #tpu.memory_space<semaphore_mem>>
    tpu.enqueue_dma source(%4 : memref<10x24x128xbf16, #tpu.memory_space<any>>) target(%6 : memref<10x24x128xbf16, #tpu.memory_space<vmem>>) target_semaphore(%8 : memref<!tpu.dma_semaphore, #tpu.memory_space<semaphore_mem>>)
    %c0 = arith.constant 0 : index
    %c0_7 = arith.constant 0 : index
    %9 = vector.load %arg4[%c0, %c0_7] : memref<1x128xf32, #tpu.memory_space<vmem>>, vector<1x128xf32>
    %c8_i32 = arith.constant 8 : i32
    %10 = arith.addi %1, %c8_i32 : i32
    %c1_i32 = arith.constant 1 : i32
    %c1_i32_8 = arith.constant 1 : i32
    %c0_i32_9 = arith.constant 0 : i32
    %c0_i32_10 = arith.constant 0 : i32
    %11 = tpu.memref_slice %arg2[%arg0, %10, %c0_i32_9, %c0_i32_10] : memref<2x18x24x128xbf16, #tpu.memory_space<any>> -> memref<1x10x24x128xbf16, #tpu.memory_space<any>>
    %12 = tpu.memref_squeeze %11 : memref<1x10x24x128xbf16, #tpu.memory_space<any>> -> memref<10x24x128xbf16, #tpu.memory_space<any>>
    %c0_i32_11 = arith.constant 0 : i32
    %c0_i32_12 = arith.constant 0 : i32
    %c0_i32_13 = arith.constant 0 : i32
    %13 = tpu.memref_slice %arg6[%c1_i32, %c0_i32_11, %c0_i32_12, %c0_i32_13] : memref<2x10x24x128xbf16, #tpu.memory_space<vmem>> -> memref<1x10x24x128xbf16, #tpu.memory_space<vmem>>
    %14 = tpu.memref_squeeze %13 : memref<1x10x24x128xbf16, #tpu.memory_space<vmem>> -> memref<10x24x128xbf16, #tpu.memory_space<vmem>>
    %15 = tpu.memref_slice %arg7[%c1_i32_8] : memref<2x!tpu.dma_semaphore, #tpu.memory_space<semaphore_mem>> -> memref<1x!tpu.dma_semaphore, #tpu.memory_space<semaphore_mem>>
    %16 = tpu.memref_squeeze %15 : memref<1x!tpu.dma_semaphore, #tpu.memory_space<semaphore_mem>> -> memref<!tpu.dma_semaphore, #tpu.memory_space<semaphore_mem>>
    tpu.enqueue_dma source(%12 : memref<10x24x128xbf16, #tpu.memory_space<any>>) target(%14 : memref<10x24x128xbf16, #tpu.memory_space<vmem>>) target_semaphore(%16 : memref<!tpu.dma_semaphore, #tpu.memory_space<semaphore_mem>>)
    %c0_i32_14 = arith.constant 0 : i32
    %c0_i32_15 = arith.constant 0 : i32
    %c0_i32_16 = arith.constant 0 : i32
    %c0_i32_17 = arith.constant 0 : i32
    %c0_i32_18 = arith.constant 0 : i32
    %17 = tpu.memref_slice %arg2[%arg0, %c0_i32_16, %c0_i32_17, %c0_i32_18] : memref<2x18x24x128xbf16, #tpu.memory_space<any>> -> memref<1x10x24x128xbf16, #tpu.memory_space<any>>
    %18 = tpu.memref_squeeze %17 : memref<1x10x24x128xbf16, #tpu.memory_space<any>> -> memref<10x24x128xbf16, #tpu.memory_space<any>>
    %c0_i32_19 = arith.constant 0 : i32
    %c0_i32_20 = arith.constant 0 : i32
    %c0_i32_21 = arith.constant 0 : i32
    %19 = tpu.memref_slice %arg6[%c0_i32_14, %c0_i32_19, %c0_i32_20, %c0_i32_21] : memref<2x10x24x128xbf16, #tpu.memory_space<vmem>> -> memref<1x10x24x128xbf16, #tpu.memory_space<vmem>>
    %20 = tpu.memref_squeeze %19 : memref<1x10x24x128xbf16, #tpu.memory_space<vmem>> -> memref<10x24x128xbf16, #tpu.memory_space<vmem>>
    %21 = tpu.memref_slice %arg7[%c0_i32_15] : memref<2x!tpu.dma_semaphore, #tpu.memory_space<semaphore_mem>> -> memref<1x!tpu.dma_semaphore, #tpu.memory_space<semaphore_mem>>
    %22 = tpu.memref_squeeze %21 : memref<1x!tpu.dma_semaphore, #tpu.memory_space<semaphore_mem>> -> memref<!tpu.dma_semaphore, #tpu.memory_space<semaphore_mem>>
    tpu.wait_dma2 semaphore(%22 : memref<!tpu.dma_semaphore, #tpu.memory_space<semaphore_mem>>) src(%18 : memref<10x24x128xbf16, #tpu.memory_space<any>>) dst(%20 : memref<10x24x128xbf16, #tpu.memory_space<vmem>>)
    %c0_22 = arith.constant 0 : index
    %c0_23 = arith.constant 0 : index
    %c0_24 = arith.constant 0 : index
    %c0_25 = arith.constant 0 : index
    %23 = vector.load %arg6[%c0_22, %c0_23, %c0_24, %c0_25] : memref<2x10x24x128xbf16, #tpu.memory_space<vmem>>, vector<1x10x16x128xbf16>
    %24 = vector.shape_cast %23 : vector<1x10x16x128xbf16> to vector<10x16x128xbf16>
    %c0_26 = arith.constant 0 : index
    %c0_27 = arith.constant 0 : index
    %c1 = arith.constant 1 : index
    %c0_28 = arith.constant 0 : index
    %25 = vector.load %arg6[%c0_26, %c0_27, %c1, %c0_28] : memref<2x10x24x128xbf16, #tpu.memory_space<vmem>>, vector<1x10x16x128xbf16>
    %26 = vector.shape_cast %25 : vector<1x10x16x128xbf16> to vector<10x16x128xbf16>
    %c0_29 = arith.constant 0 : index
    %c0_30 = arith.constant 0 : index
    %c2 = arith.constant 2 : index
    %c0_31 = arith.constant 0 : index
    %27 = vector.load %arg6[%c0_29, %c0_30, %c2, %c0_31] : memref<2x10x24x128xbf16, #tpu.memory_space<vmem>>, vector<1x10x16x128xbf16>
    %28 = vector.shape_cast %27 : vector<1x10x16x128xbf16> to vector<10x16x128xbf16>
    %29 = tpu.concatenate %24, %26, %28 in 2 : vector<10x16x128xbf16>, vector<10x16x128xbf16>, vector<10x16x128xbf16> -> vector<10x16x384xbf16>
    %cst = arith.constant 0.000000e+00 : f32
    %30 = vector.broadcast %cst : f32 to vector<128x128xf32>
    %31 = vector.extract_strided_slice %29 {offsets = [0, 0, 0], sizes = [8, 16, 384], strides = [1, 1, 1]} : vector<10x16x384xbf16> to vector<8x16x384xbf16>
    %32 = vector.shape_cast %31 : vector<8x16x384xbf16> to vector<128x384xbf16>
    %c0_32 = arith.constant 0 : index
    %c0_33 = arith.constant 0 : index
    %c0_34 = arith.constant 0 : index
    %33 = vector.load %arg3[%c0_32, %c0_33, %c0_34] : memref<3x384x128xbf16, #tpu.memory_space<vmem>>, vector<1x384x128xbf16>
    %34 = vector.shape_cast %33 : vector<1x384x128xbf16> to vector<384x128xbf16>
    %cst_35 = arith.constant dense<0.000000e+00> : vector<128x128xf32>
    %35 = tpu.matmul %32, %34, %cst_35 {dimension_numbers = #tpu.dot_dimension_numbers<[1], [0], [0], [1], [0, 0, 1, 1], [], []>} : vector<128x384xbf16>, vector<384x128xbf16>, vector<128x128xf32> -> vector<128x128xf32>
    %36 = arith.addf %30, %35 : vector<128x128xf32>
    %37 = vector.extract_strided_slice %29 {offsets = [1, 0, 0], sizes = [8, 16, 384], strides = [1, 1, 1]} : vector<10x16x384xbf16> to vector<8x16x384xbf16>
    %38 = vector.shape_cast %37 : vector<8x16x384xbf16> to vector<128x384xbf16>
    %c1_36 = arith.constant 1 : index
    %c0_37 = arith.constant 0 : index
    %c0_38 = arith.constant 0 : index
    %39 = vector.load %arg3[%c1_36, %c0_37, %c0_38] : memref<3x384x128xbf16, #tpu.memory_space<vmem>>, vector<1x384x128xbf16>
    %40 = vector.shape_cast %39 : vector<1x384x128xbf16> to vector<384x128xbf16>
    %cst_39 = arith.constant dense<0.000000e+00> : vector<128x128xf32>
    %41 = tpu.matmul %38, %40, %cst_39 {dimension_numbers = #tpu.dot_dimension_numbers<[1], [0], [0], [1], [0, 0, 1, 1], [], []>} : vector<128x384xbf16>, vector<384x128xbf16>, vector<128x128xf32> -> vector<128x128xf32>
    %42 = arith.addf %36, %41 : vector<128x128xf32>
    %43 = vector.extract_strided_slice %29 {offsets = [2, 0, 0], sizes = [8, 16, 384], strides = [1, 1, 1]} : vector<10x16x384xbf16> to vector<8x16x384xbf16>
    %44 = vector.shape_cast %43 : vector<8x16x384xbf16> to vector<128x384xbf16>
    %c2_40 = arith.constant 2 : index
    %c0_41 = arith.constant 0 : index
    %c0_42 = arith.constant 0 : index
    %45 = vector.load %arg3[%c2_40, %c0_41, %c0_42] : memref<3x384x128xbf16, #tpu.memory_space<vmem>>, vector<1x384x128xbf16>
    %46 = vector.shape_cast %45 : vector<1x384x128xbf16> to vector<384x128xbf16>
    %cst_43 = arith.constant dense<0.000000e+00> : vector<128x128xf32>
    %47 = tpu.matmul %44, %46, %cst_43 {dimension_numbers = #tpu.dot_dimension_numbers<[1], [0], [0], [1], [0, 0, 1, 1], [], []>} : vector<128x384xbf16>, vector<384x128xbf16>, vector<128x128xf32> -> vector<128x128xf32>
    %48 = arith.addf %42, %47 : vector<128x128xf32>
    %49 = vector.broadcast %9 : vector<1x128xf32> to vector<128x128xf32>
    %50 = arith.addf %48, %49 : vector<128x128xf32>
    %cst_44 = arith.constant 0.000000e+00 : f32
    %51 = vector.broadcast %cst_44 : f32 to vector<128x128xf32>
    %52 = arith.maximumf %50, %51 : vector<128x128xf32>
    %53 = vector.shape_cast %52 : vector<128x128xf32> to vector<8x16x128xf32>
    %54 = arith.truncf %53 : vector<8x16x128xf32> to vector<8x16x128xbf16>
    %c0_45 = arith.constant 0 : index
    %c0_46 = arith.constant 0 : index
    %c0_47 = arith.constant 0 : index
    %c0_48 = arith.constant 0 : index
    %55 = vector.load %arg5[%c0_45, %c0_46, %c0_47, %c0_48] : memref<1x16x16x128xbf16, #tpu.memory_space<vmem>>, vector<1x8x16x128xbf16>
    %56 = vector.shape_cast %55 : vector<1x8x16x128xbf16> to vector<8x16x128xbf16>
    %57 = vector.shape_cast %54 : vector<8x16x128xbf16> to vector<1x8x16x128xbf16>
    tpu.vector_store %arg5[%c0_45, %c0_46, %c0_47, %c0_48], %57 {strides = array<i32>} : memref<1x16x16x128xbf16, #tpu.memory_space<vmem>>, vector<1x8x16x128xbf16>,
    %c1_i32_49 = arith.constant 1 : i32
    %c1_i32_50 = arith.constant 1 : i32
    %c0_i32_51 = arith.constant 0 : i32
    %c0_i32_52 = arith.constant 0 : i32
    %c0_i32_53 = arith.constant 0 : i32
    %58 = tpu.memref_slice %arg2[%arg0, %c0_i32_51, %c0_i32_52, %c0_i32_53] : memref<2x18x24x128xbf16, #tpu.memory_space<any>> -> memref<1x10x24x128xbf16, #tpu.memory_space<any>>
    %59 = tpu.memref_squeeze %58 : memref<1x10x24x128xbf16, #tpu.memory_space<any>> -> memref<10x24x128xbf16, #tpu.memory_space<any>>
    %c0_i32_54 = arith.constant 0 : i32
    %c0_i32_55 = arith.constant 0 : i32
    %c0_i32_56 = arith.constant 0 : i32
    %60 = tpu.memref_slice %arg6[%c1_i32_49, %c0_i32_54, %c0_i32_55, %c0_i32_56] : memref<2x10x24x128xbf16, #tpu.memory_space<vmem>> -> memref<1x10x24x128xbf16, #tpu.memory_space<vmem>>
    %61 = tpu.memref_squeeze %60 : memref<1x10x24x128xbf16, #tpu.memory_space<vmem>> -> memref<10x24x128xbf16, #tpu.memory_space<vmem>>
    %62 = tpu.memref_slice %arg7[%c1_i32_50] : memref<2x!tpu.dma_semaphore, #tpu.memory_space<semaphore_mem>> -> memref<1x!tpu.dma_semaphore, #tpu.memory_space<semaphore_mem>>
    %63 = tpu.memref_squeeze %62 : memref<1x!tpu.dma_semaphore, #tpu.memory_space<semaphore_mem>> -> memref<!tpu.dma_semaphore, #tpu.memory_space<semaphore_mem>>
    tpu.wait_dma2 semaphore(%63 : memref<!tpu.dma_semaphore, #tpu.memory_space<semaphore_mem>>) src(%59 : memref<10x24x128xbf16, #tpu.memory_space<any>>) dst(%61 : memref<10x24x128xbf16, #tpu.memory_space<vmem>>)
    %c1_57 = arith.constant 1 : index
    %c0_58 = arith.constant 0 : index
    %c0_59 = arith.constant 0 : index
    %c0_60 = arith.constant 0 : index
    %64 = vector.load %arg6[%c1_57, %c0_58, %c0_59, %c0_60] : memref<2x10x24x128xbf16, #tpu.memory_space<vmem>>, vector<1x10x16x128xbf16>
    %65 = vector.shape_cast %64 : vector<1x10x16x128xbf16> to vector<10x16x128xbf16>
    %c1_61 = arith.constant 1 : index
    %c0_62 = arith.constant 0 : index
    %c1_63 = arith.constant 1 : index
    %c0_64 = arith.constant 0 : index
    %66 = vector.load %arg6[%c1_61, %c0_62, %c1_63, %c0_64] : memref<2x10x24x128xbf16, #tpu.memory_space<vmem>>, vector<1x10x16x128xbf16>
    %67 = vector.shape_cast %66 : vector<1x10x16x128xbf16> to vector<10x16x128xbf16>
    %c1_65 = arith.constant 1 : index
    %c0_66 = arith.constant 0 : index
    %c2_67 = arith.constant 2 : index
    %c0_68 = arith.constant 0 : index
    %68 = vector.load %arg6[%c1_65, %c0_66, %c2_67, %c0_68] : memref<2x10x24x128xbf16, #tpu.memory_space<vmem>>, vector<1x10x16x128xbf16>
    %69 = vector.shape_cast %68 : vector<1x10x16x128xbf16> to vector<10x16x128xbf16>
    %70 = tpu.concatenate %65, %67, %69 in 2 : vector<10x16x128xbf16>, vector<10x16x128xbf16>, vector<10x16x128xbf16> -> vector<10x16x384xbf16>
    %cst_69 = arith.constant 0.000000e+00 : f32
    %71 = vector.broadcast %cst_69 : f32 to vector<128x128xf32>
    %72 = vector.extract_strided_slice %70 {offsets = [0, 0, 0], sizes = [8, 16, 384], strides = [1, 1, 1]} : vector<10x16x384xbf16> to vector<8x16x384xbf16>
    %73 = vector.shape_cast %72 : vector<8x16x384xbf16> to vector<128x384xbf16>
    %c0_70 = arith.constant 0 : index
    %c0_71 = arith.constant 0 : index
    %c0_72 = arith.constant 0 : index
    %74 = vector.load %arg3[%c0_70, %c0_71, %c0_72] : memref<3x384x128xbf16, #tpu.memory_space<vmem>>, vector<1x384x128xbf16>
    %75 = vector.shape_cast %74 : vector<1x384x128xbf16> to vector<384x128xbf16>
    %cst_73 = arith.constant dense<0.000000e+00> : vector<128x128xf32>
    %76 = tpu.matmul %73, %75, %cst_73 {dimension_numbers = #tpu.dot_dimension_numbers<[1], [0], [0], [1], [0, 0, 1, 1], [], []>} : vector<128x384xbf16>, vector<384x128xbf16>, vector<128x128xf32> -> vector<128x128xf32>
    %77 = arith.addf %71, %76 : vector<128x128xf32>
    %78 = vector.extract_strided_slice %70 {offsets = [1, 0, 0], sizes = [8, 16, 384], strides = [1, 1, 1]} : vector<10x16x384xbf16> to vector<8x16x384xbf16>
    %79 = vector.shape_cast %78 : vector<8x16x384xbf16> to vector<128x384xbf16>
    %c1_74 = arith.constant 1 : index
    %c0_75 = arith.constant 0 : index
    %c0_76 = arith.constant 0 : index
    %80 = vector.load %arg3[%c1_74, %c0_75, %c0_76] : memref<3x384x128xbf16, #tpu.memory_space<vmem>>, vector<1x384x128xbf16>
    %81 = vector.shape_cast %80 : vector<1x384x128xbf16> to vector<384x128xbf16>
    %cst_77 = arith.constant dense<0.000000e+00> : vector<128x128xf32>
    %82 = tpu.matmul %79, %81, %cst_77 {dimension_numbers = #tpu.dot_dimension_numbers<[1], [0], [0], [1], [0, 0, 1, 1], [], []>} : vector<128x384xbf16>, vector<384x128xbf16>, vector<128x128xf32> -> vector<128x128xf32>
    %83 = arith.addf %77, %82 : vector<128x128xf32>
    %84 = vector.extract_strided_slice %70 {offsets = [2, 0, 0], sizes = [8, 16, 384], strides = [1, 1, 1]} : vector<10x16x384xbf16> to vector<8x16x384xbf16>
    %85 = vector.shape_cast %84 : vector<8x16x384xbf16> to vector<128x384xbf16>
    %c2_78 = arith.constant 2 : index
    %c0_79 = arith.constant 0 : index
    %c0_80 = arith.constant 0 : index
    %86 = vector.load %arg3[%c2_78, %c0_79, %c0_80] : memref<3x384x128xbf16, #tpu.memory_space<vmem>>, vector<1x384x128xbf16>
    %87 = vector.shape_cast %86 : vector<1x384x128xbf16> to vector<384x128xbf16>
    %cst_81 = arith.constant dense<0.000000e+00> : vector<128x128xf32>
    %88 = tpu.matmul %85, %87, %cst_81 {dimension_numbers = #tpu.dot_dimension_numbers<[1], [0], [0], [1], [0, 0, 1, 1], [], []>} : vector<128x384xbf16>, vector<384x128xbf16>, vector<128x128xf32> -> vector<128x128xf32>
    %89 = arith.addf %83, %88 : vector<128x128xf32>
    %90 = vector.broadcast %9 : vector<1x128xf32> to vector<128x128xf32>
    %91 = arith.addf %89, %90 : vector<128x128xf32>
    %cst_82 = arith.constant 0.000000e+00 : f32
    %92 = vector.broadcast %cst_82 : f32 to vector<128x128xf32>
    %93 = arith.maximumf %91, %92 : vector<128x128xf32>
    %94 = vector.shape_cast %93 : vector<128x128xf32> to vector<8x16x128xf32>
    %95 = arith.truncf %94 : vector<8x16x128xf32> to vector<8x16x128xbf16>
    %c0_83 = arith.constant 0 : index
    %c8 = arith.constant 8 : index
    %c0_84 = arith.constant 0 : index
    %c0_85 = arith.constant 0 : index
    %96 = vector.load %arg5[%c0_83, %c8, %c0_84, %c0_85] : memref<1x16x16x128xbf16, #tpu.memory_space<vmem>>, vector<1x8x16x128xbf16>
    %97 = vector.shape_cast %96 : vector<1x8x16x128xbf16> to vector<8x16x128xbf16>
    %98 = vector.shape_cast %95 : vector<8x16x128xbf16> to vector<1x8x16x128xbf16>
    tpu.vector_store %arg5[%c0_83, %c8, %c0_84, %c0_85], %98 {strides = array<i32>} : memref<1x16x16x128xbf16, #tpu.memory_space<vmem>>, vector<1x8x16x128xbf16>,
    return
  }
  func.func @transform_1(%arg0: i32, %arg1: i32) -> (i32, i32, i32) {
    %c0_i32 = arith.constant 0 : i32
    %c0_i32_0 = arith.constant 0 : i32
    %c0_i32_1 = arith.constant 0 : i32
    %c0_i32_2 = arith.constant 0 : i32
    return %c0_i32, %c0_i32_0, %c0_i32_1 : i32, i32, i32
  }
  func.func @transform_2(%arg0: i32, %arg1: i32) -> (i32, i32) {
    %c0_i32 = arith.constant 0 : i32
    %c0_i32_0 = arith.constant 0 : i32
    %c0_i32_1 = arith.constant 0 : i32
    return %c0_i32, %c0_i32_0 : i32, i32
  }
  func.func @transform_3(%arg0: i32, %arg1: i32) -> (i32, i32, i32, i32) {
    %c0_i32 = arith.constant 0 : i32
    %c0_i32_0 = arith.constant 0 : i32
    %c0_i32_1 = arith.constant 0 : i32
    return %arg0, %arg1, %c0_i32, %c0_i32_0 : i32, i32, i32, i32
  }
}

</mosaic_0001>

<bundles_post_ra>
// kernel: repvgg_forward.1
= control target key start
LH: loop header
LB: loop body
LE: loop exit
PB: predicated region body
PF: predicated region fallthrough
CT: control target
= control target key end

     0   :  { %s5381_s12 = smov 0   ;;  %s5383_s13 = smov 0   ;;  %s6526_s0 = inlined_call_operand.vmem [shape: bf16[2,18,24,128], index: 0, kind: input, shape index: {}]   ;;  %s6527_s1 = inlined_call_operand.vmem [shape: bf16[3,384,128], index: 1, kind: input, shape index: {}]   ;;  %s6528_s2 = inlined_call_operand.vmem [shape: f32[1,128], index: 2, kind: input, shape index: {}]   ;;  %s6529_s3 = inlined_call_operand.vmem [shape: bf16[2,16,16,128], index: 3, kind: output, shape index: {}]  }
   0x1   :  { %s5385_s14 = smov 0  }
   0x2 LB: > { %s25_s15 = sadd.s32 1, %s5355_s13  ;;  %p3674_p0 = scmp.ge.s32.totalorder %s5359_s14, 1  ;;  %s5359_s14 = sphi %s5385_s14, %s13_s14   ;;  %s5355_s13 = sphi %s5383_s13, %s6531_s13   ;;  %s5351_s12 = sphi %s5381_s12, %s6530_s12  }
   0x3   : > { %p27_p1 = scmp.ge.s32.totalorder %s25_s15, 2  ;;  %p117_p2 = scmp.lt.s32.totalorder %s5359_s14, 3 }
   0x5   : > { %s6533_s15 = smov (%p27_p1, %s25_s15), 0  ;;  %p118_p3 = pnand %p3674_p0, %p117_p2 }
   0x6   : > { %p140_p4 = scmp.lt.s32.totalorder (!%p118_p3), %s5351_s12, 1  ;;  %s4145_s16 = smul.u32 (!%p118_p3), 216, %s5351_s12 }
   0x7   : > { %121 = sbr.rel (%p118_p3) target bundleno = 853 (0x355), region = 28 }
   0x8   : > { %s5402_s19 = scalar_lea.vmem (!%p118_p3), %s6526_s0, %s4145_s16 }
   0x9   : > { %v189_v0 = vld [vmem:[%s5402_s19] sm:$0xff] (!%p118_p3)  ;;  %v191_v1 = vld [vmem:[%s5402_s19 + $0x8] sm:$0xff] (!%p118_p3)  ;;  %v193_v2 = vld [vmem:[%s5402_s19 + $0x10] sm:$0xff] (!%p118_p3) }
   0xa   : > { %190 = vst [vmem:[#allocation2] sm:$0xff] (!%p118_p3), %v189_v0  ;;  %192 = vst [vmem:[#allocation2 + $0x8] sm:$0xff] (!%p118_p3), %v191_v1  ;;  %v195_v3 = vld [vmem:[%s5402_s19 + $0x18] sm:$0xff] (!%p118_p3)  ;;  %v197_v4 = vld [vmem:[%s5402_s19 + $0x20] sm:$0xff] (!%p118_p3) }
   0xb   : > { %194 = vst [vmem:[#allocation2 + $0x10] sm:$0xff] (!%p118_p3), %v193_v2  ;;  %v199_v5 = vld [vmem:[%s5402_s19 + $0x28] sm:$0xff] (!%p118_p3)  ;;  %196 = vst [vmem:[#allocation2 + $0x18] sm:$0xff] (!%p118_p3), %v195_v3  ;;  %v201_v6 = vld [vmem:[%s5402_s19 + $0x30] sm:$0xff] (!%p118_p3) }
   0xc   : > { %198 = vst [vmem:[#allocation2 + $0x20] sm:$0xff] (!%p118_p3), %v197_v4  ;;  %200 = vst [vmem:[#allocation2 + $0x28] sm:$0xff] (!%p118_p3), %v199_v5  ;;  %v203_v7 = vld [vmem:[%s5402_s19 + $0x38] sm:$0xff] (!%p118_p3)  ;;  %v205_v8 = vld [vmem:[%s5402_s19 + $0x40] sm:$0xff] (!%p118_p3) }
   0xd   : > { %202 = vst [vmem:[#allocation2 + $0x30] sm:$0xff] (!%p118_p3), %v201_v6  ;;  %204 = vst [vmem:[#allocation2 + $0x38] sm:$0xff] (!%p118_p3), %v203_v7  ;;  %v207_v9 = vld [vmem:[%s5402_s19 + $0x48] sm:$0xff] (!%p118_p3)  ;;  %v209_v10 = vld [vmem:[%s5402_s19 + $0x50] sm:$0xff] (!%p118_p3) }
   0xe   : > { %s6535_s12 = smov (!%p140_p4, %s5351_s12), 1  ;;  %206 = vst [vmem:[#allocation2 + $0x40] sm:$0xff] %v205_v8  ;;  %v211_v11 = vld [vmem:[%s5402_s19 + $0x58] sm:$0xff]  ;;  %208 = vst [vmem:[#allocation2 + $0x48] sm:$0xff] %v207_v9  ;;  %v213_v12 = vld [vmem:[%s5402_s19 + $0x60] sm:$0xff] }
   0xf   : > { %s4144_s20 = sshll.u32 %s6535_s12, 7  ;;  %210 = vst [vmem:[#allocation2 + $0x50] sm:$0xff] %v209_v10  ;;  %212 = vst [vmem:[#allocation2 + $0x58] sm:$0xff] %v211_v11  ;;  %v215_v13 = vld [vmem:[%s5402_s19 + $0x68] sm:$0xff]  ;;  %v217_v14 = vld [vmem:[%s5402_s19 + $0x70] sm:$0xff] }
  0x10   : > { %s5410_s23 = scalar_lea.vmem %s6529_s3, %s4144_s20  ;;  %214 = vst [vmem:[#allocation2 + $0x60] sm:$0xff] %v213_v12  ;;  %216 = vst [vmem:[#allocation2 + $0x68] sm:$0xff] %v215_v13 }
  0x11   : > { %218 = vst [vmem:[#allocation2 + $0x70] sm:$0xff] %v217_v14 }
  0x12   : > { %226 = vsyncadd [#allocation3], 1920  ;;  %v5427_v15 = vld [vmem:[%s6528_s2] ss:$0 sm:$0xff]  ;;  %v3680_v17 = vld [vmem:[%s5402_s19 + $0x68] sm:$0xff] }
  0x13   : > { %v3679_v16 = vld [vmem:[%s5402_s19 + $0x60] sm:$0xff]  ;;  %v3681_v18 = vld [vmem:[%s5402_s19 + $0x70] sm:$0xff]  ;;  %v3682_v19 = vld [vmem:[%s5402_s19 + $0x78] sm:$0xff]  ;;  %270 = vst [vmem:[#allocation2 + $0x80] sm:$0xff] %v3680_v17 }
  0x14   : > { %268 = vst [vmem:[#allocation2 + $0x78] sm:$0xff] %v3679_v16  ;;  %272 = vst [vmem:[#allocation2 + $0x88] sm:$0xff] %v3681_v18  ;;  %v3683_v20 = vld [vmem:[%s5402_s19 + $0x80] sm:$0xff]  ;;  %v3684_v21 = vld [vmem:[%s5402_s19 + $0x88] sm:$0xff] }
  0x15   : > { %274 = vst [vmem:[#allocation2 + $0x90] sm:$0xff] %v3682_v19  ;;  %v3685_v22 = vld [vmem:[%s5402_s19 + $0x90] sm:$0xff]  ;;  %276 = vst [vmem:[#allocation2 + $0x98] sm:$0xff] %v3683_v20  ;;  %v3686_v23 = vld [vmem:[%s5402_s19 + $0x98] sm:$0xff] }
  0x16   : > { %278 = vst [vmem:[#allocation2 + $0xa0] sm:$0xff] %v3684_v21  ;;  %280 = vst [vmem:[#allocation2 + $0xa8] sm:$0xff] %v3685_v22  ;;  %v3687_v24 = vld [vmem:[%s5402_s19 + $0xa0] sm:$0xff]  ;;  %v3688_v25 = vld [vmem:[%s5402_s19 + $0xa8] sm:$0xff] }
  0x17   : > { %282 = vst [vmem:[#allocation2 + $0xb0] sm:$0xff] %v3686_v23  ;;  %284 = vst [vmem:[#allocation2 + $0xb8] sm:$0xff] %v3687_v24  ;;  %v3689_v26 = vld [vmem:[%s5402_s19 + $0xb0] sm:$0xff]  ;;  %v3690_v27 = vld [vmem:[%s5402_s19 + $0xb8] sm:$0xff] }
  0x18   : > { %286 = vst [vmem:[#allocation2 + $0xc0] sm:$0xff] %v3688_v25  ;;  %v3691_v28 = vld [vmem:[%s5402_s19 + $0xc0] sm:$0xff]  ;;  %288 = vst [vmem:[#allocation2 + $0xc8] sm:$0xff] %v3689_v26  ;;  %v3692_v29 = vld [vmem:[%s5402_s19 + $0xc8] sm:$0xff] }
  0x19   : > { %290 = vst [vmem:[#allocation2 + $0xd0] sm:$0xff] %v3690_v27  ;;  %292 = vst [vmem:[#allocation2 + $0xd8] sm:$0xff] %v3691_v28  ;;  %v3693_v30 = vld [vmem:[%s5402_s19 + $0xd0] sm:$0xff] }
  0x1a   : > { %294 = vst [vmem:[#allocation2 + $0xe0] sm:$0xff] %v3692_v29  ;;  %296 = vst [vmem:[#allocation2 + $0xe8] sm:$0xff] %v3693_v30 }
  0x1b   : > { %304 = vsyncadd [#allocation3 + $0x1], 1920 }
  0x1c   : > { %5345 = dma.done.wait [#allocation3], 1920 }
  0x1d   : > { %5346 = vsyncadd [#allocation3], 4294965376  ;;  %v5129_v31 = vld [vmem:[%s6527_s1 + $0x100] sm:$0xff]   ;;  %v5133_v35 = vld [vmem:[%s6527_s1 + $0x108] sm:$0xff]   ;;  %vm440_vm0 = vsmask.f32 7424 }
  0x1e   : > { %v5130_v32 = vld [vmem:[%s6527_s1 + $0xc0] sm:$0xff]   ;;  %4273 = vmatprep.subr.bf16.mxu0 %v5129_v31  ;;  %v5134_v36 = vld [vmem:[%s6527_s1 + $0xc8] sm:$0xff]   ;;  %v5137_v39 = vld [vmem:[%s6527_s1 + $0x110] sm:$0xff]   ;;  %vm601_vm1 = vcmask 1046528  }
  0x1f   : > { %v5131_v33 = vld [vmem:[%s6527_s1 + $0x40] sm:$0xff]   ;;  %4274 = vmatpush3.bf16.msra.mxu0 %v5130_v32  ;;  %v5135_v37 = vld [vmem:[%s6527_s1 + $0x48] sm:$0xff]   ;;  %v5138_v40 = vld [vmem:[%s6527_s1 + $0xd0] sm:$0xff]  }
  0x20   : > { %v5132_v34 = vld [vmem:[%s6527_s1] sm:$0xff]   ;;  %4353 = vmatprep.subr.bf16.mxu1 %v5131_v33  ;;  %4275 = vmatprep.subr.bf16.mxu0 %v5133_v35  ;;  %v5136_v38 = vld [vmem:[%s6527_s1 + $0x8] sm:$0xff]   ;;  %v5139_v41 = vld [vmem:[%s6527_s1 + $0x50] sm:$0xff]  }
  0x21   : > { %4354 = vmatpush3.bf16.msra.mxu1 %v5132_v34  ;;  %v5140_v42 = vld [vmem:[%s6527_s1 + $0x10] sm:$0xff]   ;;  %v5141_v43 = vld [vmem:[%s6527_s1 + $0x118] sm:$0xff]   ;;  %v5145_v47 = vld [vmem:[%s6527_s1 + $0x120] sm:$0xff]  }
  0x22   : > { %4355 = vmatprep.subr.bf16.mxu1 %v5135_v37  ;;  %v5142_v44 = vld [vmem:[%s6527_s1 + $0xd8] sm:$0xff]   ;;  %v5146_v48 = vld [vmem:[%s6527_s1 + $0xe0] sm:$0xff]   ;;  %v5149_v51 = vld [vmem:[%s6527_s1 + $0x128] sm:$0xff]  }
  0x23   : > { %4276 = vmatpush3.bf16.msra.mxu0 %v5134_v36  ;;  %v5143_v45 = vld [vmem:[%s6527_s1 + $0x58] sm:$0xff]   ;;  %v5147_v49 = vld [vmem:[%s6527_s1 + $0x60] sm:$0xff]   ;;  %v5150_v52 = vld [vmem:[%s6527_s1 + $0xe8] sm:$0xff]  }
  0x24   : > { %4277 = vmatprep.subr.bf16.mxu0 %v5137_v39  ;;  %v5144_v46 = vld [vmem:[%s6527_s1 + $0x18] sm:$0xff]   ;;  %v5148_v50 = vld [vmem:[%s6527_s1 + $0x20] sm:$0xff]   ;;  %v5151_v53 = vld [vmem:[%s6527_s1 + $0x68] sm:$0xff]  }
  0x25   : > { %4356 = vmatpush3.bf16.msra.mxu1 %v5136_v38  ;;  %v5152_v54 = vld [vmem:[%s6527_s1 + $0x28] sm:$0xff]   ;;  %v5153_v55 = vld [vmem:[%s6527_s1 + $0x130] sm:$0xff]   ;;  %v5157_v59 = vld [vmem:[%s6527_s1 + $0x138] sm:$0xff]  }
  0x26   : > { %4357 = vmatprep.subr.bf16.mxu1 %v5139_v41  ;;  %v5154_v56 = vld [vmem:[%s6527_s1 + $0xf0] sm:$0xff]   ;;  %v5158_v60 = vld [vmem:[%s6527_s1 + $0xf8] sm:$0xff]   ;;  %v312_v62 = vld [vmem:[#allocation2 + $0xc] sm:$0xf] }
  0x27   : > { %4278 = vmatpush3.bf16.msra.mxu0 %v5138_v40  ;;  %v5155_v57 = vld [vmem:[%s6527_s1 + $0x70] sm:$0xff]   ;;  %v5159_v61 = vld [vmem:[%s6527_s1 + $0x78] sm:$0xff]   ;;  %v5163_v6 = vld [vmem:[%s6527_s1 + $0x140] sm:$0xff]  }
  0x28   : > { %4279 = vmatprep.subr.bf16.mxu0 %v5141_v43  ;;  %v5156_v58 = vld [vmem:[%s6527_s1 + $0x30] sm:$0xff]   ;;  %v5162_v2 = vld [vmem:[%s6527_s1 + $0x38] sm:$0xff]   ;;  %v310_v7 = vld [vmem:[#allocation2] sm:$0xf] }
  0x29   : > { %4358 = vmatpush3.bf16.msra.mxu1 %v5140_v42  ;;  %v5537_v63 = vld [vmem:[#allocation2 + $0x10] sm:$0xf]  ;;  %v5542_v1 = vld [vmem:[#allocation2 + $0x14] ss:$0 sps:$4 sm:$0x11]   ;;  %v5168_v28 = vld [vmem:[%s6527_s1 + $0x148] sm:$0xff]  }
  0x2a   : > { %4359 = vmatprep.subr.bf16.mxu1 %v5143_v45  ;;  %v5540_v0 = vcombine.low %v312_v62, %v5537_v63  ;;  %v461_v5 = vshll.u32 %v5542_v1, 16  ;;  %v5553_v8 = vld [vmem:[#allocation2 + $0x4] sm:$0xf]  ;;  %v314_v9 = vld [vmem:[#allocation2 + $0x18] sm:$0xf]  ;;  %v5171_v35 = vld [vmem:[%s6527_s1 + $0x150] sm:$0xff]  }
  0x2b   : > { %4280 = vmatpush3.bf16.msra.mxu0 %v5142_v44  ;;  %v3695_v12 = vcombine.low %v310_v7, %v5553_v8  ;;  %v5556_v13 = vld [vmem:[#allocation2 + $0x8] ss:$0 sps:$4 sm:$0x11]   ;;  %v5558_v14 = vld [vmem:[#allocation2 + $0x1c] sm:$0xf]  ;;  %v5177_v62 = vld [vmem:[%s6527_s1 + $0x160] sm:$0xff]  }
  0x2c   : > { %4281 = vmatprep.subr.bf16.mxu0 %v5145_v47  ;;  %v454_v3 = vshrl.u32 %v5540_v0, 16  ;;  %v456_v4 = vshll.u32 %v5540_v0, 16  ;;  %v463_v11 = vrot.slane %v461_v5, 1  ;;  %v449_v19 = vshll.u32 %v5556_v13, 16  ;;  %v316_v22 = vld [vmem:[#allocation2 + $0x24] sm:$0xf] }
  0x2d   : > { %4360 = vmatpush3.bf16.msra.mxu1 %v5144_v46  ;;  %v442_v17 = vshrl.u32 %v3695_v12, 16  ;;  %v444_v18 = vshll.u32 %v3695_v12, 16  ;;  %v5561_v20 = vld [vmem:[#allocation2 + $0x20] ss:$0 sps:$4 sm:$0x11]   ;;  %v5564_v21 = vcombine.low %v314_v9, %v5558_v14 }
  0x2e   : > { %4361 = vmatprep.subr.bf16.mxu1 %v5147_v49  ;;  %v458_v10 = vrot.slane %v456_v4, 1  ;;  %v5566_v23 = vld [vmem:[#allocation2 + $0x28] sm:$0xf]  ;;  %v451_v26 = vrot.slane %v449_v19, 1  ;;  %v473_v27 = vshll.u32 %v5561_v20, 16 }
  0x2f   : > { %4282 = vmatpush3.bf16.msra.mxu0 %v5146_v48  ;;  %v446_v25 = vrot.slane %v444_v18, 1  ;;  %v466_v29 = vshrl.u32 %v5564_v21, 16  ;;  %v468_v30 = vshll.u32 %v5564_v21, 16  ;;  %v5576_v31 = vcombine.low %v316_v22, %v5566_v23  ;;  %v5578_v32 = vld [vmem:[#allocation2 + $0x2c] ss:$0 sps:$4 sm:$0x11]  }
  0x30   : > { %4283 = vmatprep.subr.bf16.mxu0 %v5149_v51  ;;  %v459_v16 = vor.u32 %v458_v10, %v454_v3  ;;  %v475_v34 = vrot.slane %v473_v27, 1  ;;  %v485_v39 = vshll.u32 %v5578_v32, 16  ;;  %v318_v40 = vld [vmem:[#allocation2 + $0x30] sm:$0xf]  ;;  %v5588_v42 = vld [vmem:[#allocation2 + $0x34] sm:$0xf] }
  0x31   : > { %4362 = vmatpush3.bf16.msra.mxu1 %v5148_v50  ;;  %v447_v33 = vor.u32 %v446_v25, %v442_v17  ;;  %v470_v36 = vrot.slane %v468_v30, 1  ;;  %v478_v37 = vshrl.u32 %v5576_v31, 16  ;;  %v480_v38 = vshll.u32 %v5576_v31, 16  ;;  %v5593_v47 = vld [vmem:[#allocation2 + $0x38] ss:$0 sps:$4 sm:$0x11]  }
  0x32   : > { %4363 = vmatprep.subr.bf16.mxu1 %v5151_v53  ;;  %v464_v24 = vsel %vm440_vm0, %v459_v16, %v463_v11  ;;  %v487_v45 = vrot.slane %v485_v39, 1  ;;  %v5591_v46 = vcombine.low %v318_v40, %v5588_v42  ;;  %v5178_v48 = vld [vmem:[%s6527_s1 + $0x80] sm:$0xff]   ;;  %v320_v49 = vld [vmem:[#allocation2 + $0x3c] sm:$0xf]  ;;  %v322_v4 = vld [vmem:[#allocation2 + $0x48] sm:$0xf] }
  0x33   : > { %4284 = vmatpush3.bf16.msra.mxu0 %v5150_v52  ;;  %915 = vmatprep.mubr.bf16.mxu0 %v464_v24  ;;  %v452_v41 = vsel %vm440_vm0, %v447_v33, %v451_v26  ;;  %v471_v43 = vor.u32 %v470_v36, %v466_v29  ;;  %v482_v44 = vrot.slane %v480_v38, 1  ;;  %v5598_v50 = vld [vmem:[#allocation2 + $0x40] sm:$0xf]  ;;  %v5183_v10 = vld [vmem:[%s6527_s1 + $0x90] sm:$0xff]   ;;  %v5184_v18 = vld [vmem:[%s6527_s1 + $0x98] sm:$0xff]  }
  0x34   : > { %4285 = vmatprep.subr.bf16.mxu0 %v5153_v55  ;;  %1253 = vmatprep.mubr.bf16.mxu1 %v452_v41  ;;  %v492_v53 = vshll.u32 %v5591_v46, 16  ;;  %v497_v55 = vshll.u32 %v5593_v47, 16  ;;  %v5645_v17 = vld [vmem:[#allocation2 + $0x50] ss:$0 sps:$4 sm:$0x11]  }
  0x35   : > { %4364 = vmatpush3.bf16.msra.mxu1 %v5152_v54  ;;  %v5601_v51 = vsel %vm440_vm0, %v471_v43, %v475_v34  ;;  %v483_v52 = vor.u32 %v482_v44, %v478_v37  ;;  %v490_v54 = vshrl.u32 %v5591_v46, 16  ;;  %v324_v26 = vld [vmem:[#allocation2 + $0x54] sm:$0xf]  ;;  %v5656_v27 = vld [vmem:[#allocation2 + $0x58] sm:$0xf]  ;;  %v521_v29 = vshll.u32 %v5645_v17, 16 }
  0x36   : > { %4365 = vmatprep.subr.bf16.mxu1 %v5155_v57  ;;  %v5611_v57 = vcombine.low %v320_v49, %v5598_v50  ;;  %v5192_v34 = vld [vmem:[%s6527_s1 + $0x178] sm:$0xff]   ;;  %v5672_v36 = vcombine.low %v324_v26, %v5656_v27  ;;  %v5189_v37 = vld [vmem:[%s6527_s1 + $0xa8] sm:$0xff]   ;;  %v326_v40 = vld [vmem:[#allocation2 + $0x60] sm:$0xf]  ;;  %v606_v26 = vrot.slane %v5542_v1, 1 }
  0x37   : > { %4286 = vmatpush3.bf16.msra.mxu0 %v5154_v56  ;;  %v5174_v56 = vld [vmem:[%s6527_s1 + $0x158] sm:$0xff]   ;;  %v523_v38 = vrot.slane %v521_v29, 1  ;;  %v5682_v44 = vld [vmem:[#allocation2 + $0x64] sm:$0xf] }
  0x38   : > { %4287 = vmatprep.subr.bf16.mxu0 %v5157_v59  ;;  %v494_v59 = vrot.slane %v492_v53, 1  ;;  %v504_v3 = vshll.u32 %v5611_v57, 16  ;;  %v5678_v39 = vld [vmem:[#allocation2 + $0x5c] ss:$0 sps:$4 sm:$0x11]   ;;  %v528_v43 = vshll.u32 %v5672_v36, 16 }
  0x39   : > { %4366 = vmatpush3.bf16.msra.mxu1 %v5156_v58  ;;  %v5614_v58 = vsel %vm440_vm0, %v483_v52, %v487_v45  ;;  %v5197_v45 = vld [vmem:[%s6527_s1 + $0x1c0] sm:$0xff]   ;;  %v526_v49 = vshrl.u32 %v5672_v36, 16 }
  0x3a   : > { %4367 = vmatprep.subr.bf16.mxu1 %v5159_v61  ;;  %v5620_v61 = vld [vmem:[#allocation2 + $0x44] ss:$0 sps:$4 sm:$0x11]   ;;  %v495_v5 = vor.u32 %v494_v59, %v490_v54  ;;  %v506_v16 = vrot.slane %v504_v3, 1  ;;  %v530_v53 = vrot.slane %v528_v43, 1  ;;  %v533_v54 = vshll.u32 %v5678_v39, 16 }
  0x3b   : > { %4288 = vmatpush3.bf16.msra.mxu0 %v5158_v60  ;;  %v5179_v60 = vld [vmem:[%s6527_s1 + $0x88] sm:$0xff]   ;;  %v509_v7 = vshll.u32 %v5620_v61, 16  ;;  %v5711_v3 = vld [vmem:[%s6527_s1 + $0x200] sm:$0xff]   ;;  %v344_v43 = vld [vmem:[#allocation2 + $0x30] sm:$0xe] }
  0x3c   : > { %4753 = vmatprep.subr.bf16.mxu0 %v5163_v6  ;;  %v5704_v59 = vld [vmem:[#allocation2 + $0x68] ss:$0 sps:$4 sm:$0x11]   ;;  %v343_v29 = vld [vmem:[#allocation2 + $0x24] sm:$0xe] }
  0x3d   : > { %4368 = vmatpush3.bf16.msra.mxu1 %v5162_v2  ;;  %v499_v2 = vrot.slane %v497_v55, 1  ;;  %v511_v19 = vrot.slane %v509_v7, 1  ;;  %v5698_v55 = vcombine.low %v326_v40, %v5682_v44 }
  0x3e   : > { %916 = vmatmul.mubr.bf16.vlgmr.msra.gmra.mrb[0].mxu0 %v5540_v0  ;;  %4785 = vmatprep.subr.bf16.mxu1 %v5178_v48 }
  0x3f   : > { %4754 = vmatpush3.bf16.msra.mxu0 %v5163_v6  ;;  %923 = vmatprep.mubr.bf16.mxu0 %v5601_v51  ;;  %v5627_v6 = vld [vmem:[#allocation2 + $0x4c] sm:$0xf]  ;;  %v5639_v11 = vsel %vm440_vm0, %v495_v5, %v499_v2  ;;  %v540_v2 = vshll.u32 %v5698_v55, 16  ;;  %v538_v5 = vshrl.u32 %v5698_v55, 16 }
  0x40   : > { %4755 = vmatprep.subr.bf16.mxu0 %v5168_v28  ;;  %1254 = vmatmul.mubr.bf16.vlgmr.msra.gmra.mrb[0].mxu1 %v3695_v12  ;;  %v5633_v9 = vcombine.low %v322_v4, %v5627_v6  ;;  %v502_v12 = vshrl.u32 %v5611_v57, 16 }
  0x41   : > { %1261 = vmatprep.mubr.bf16.mxu1 %v464_v24  ;;  %4786 = vmatpush3.bf16.msra.mxu1 %v5178_v48  ;;  %v5187_v24 = vld [vmem:[%s6527_s1 + $0x170] sm:$0xff]   ;;  %v542_v7 = vrot.slane %v540_v2, 1 }
  0x42   : > { %4787 = vmatprep.subr.bf16.mxu1 %v5179_v60  ;;  %v516_v22 = vshll.u32 %v5633_v9, 16  ;;  %v507_v25 = vor.u32 %v506_v16, %v502_v12  ;;  %v514_v30 = vshrl.u32 %v5633_v9, 16  ;;  %v5193_v48 = vld [vmem:[%s6527_s1 + $0xb0] sm:$0xff]  }
  0x43   : > { %4756 = vmatpush3.bf16.msra.mxu0 %v5168_v28  ;;  %v5188_v28 = vld [vmem:[%s6527_s1 + $0xa0] sm:$0xff]   ;;  %v543_v12 = vor.u32 %v542_v7, %v538_v5  ;;  %v347_v7 = vld [vmem:[#allocation2 + $0x54] sm:$0xe] }
  0x44   : > { %4757 = vmatprep.subr.bf16.mxu0 %v5171_v35  ;;  %v518_v33 = vrot.slane %v516_v22, 1  ;;  %v340_v22 = vld [vmem:[#allocation2] sm:$0xe] }
  0x45   : > { %4788 = vmatpush3.bf16.msra.mxu1 %v5179_v60  ;;  %v531_v60 = vor.u32 %v530_v53, %v526_v49  ;;  %v5202_v49 = vld [vmem:[%s6527_s1 + $0x188] sm:$0xff]   ;;  %v615_v53 = vrot.slane %v5593_v47, 1  ;;  %v5207_v47 = vld [vmem:[%s6527_s1 + $0x190] sm:$0xff]  }
  0x46   : > { %924 = vmatmul.mubr.bf16.gmra.mrb[4].mxu0 %v5564_v21  ;;  %4789 = vmatprep.subr.bf16.mxu1 %v5183_v10  ;;  %v519_v41 = vor.u32 %v518_v33, %v514_v30 }
  0x47   : > { %931 = vmatprep.mubr.bf16.mxu0 %v5614_v58  ;;  %4758 = vmatpush3.bf16.msra.mxu0 %v5171_v35  ;;  %v5669_v35 = vsel %vm440_vm0, %v507_v25, %v511_v19 }
  0x48   : > { %4759 = vmatprep.subr.bf16.mxu0 %v5174_v56  ;;  %1262 = vmatmul.mubr.bf16.gmra.mrb[4].mxu1 %v5540_v0  ;;  %v5182_v0 = vld [vmem:[%s6527_s1 + $0x168] sm:$0xff]   ;;  %v5694_v52 = vsel %vm440_vm0, %v519_v41, %v523_v38  ;;  %v612_v41 = vrot.slane %v5578_v32, 1 }
  0x49   : > { %1269 = vmatprep.mubr.bf16.mxu1 %v5601_v51  ;;  %4790 = vmatpush3.bf16.msra.mxu1 %v5183_v10  ;;  %v545_v10 = vshll.u32 %v5704_v59, 16 }
  0x4a   : > { %4791 = vmatprep.subr.bf16.mxu1 %v5184_v18 }
  0x4b   : > { %4760 = vmatpush3.bf16.msra.mxu0 %v5174_v56  ;;  %v5194_v56 = vld [vmem:[%s6527_s1 + $0xb8] sm:$0xff]   ;;  %v547_v16 = vrot.slane %v545_v10, 1  ;;  %v5208_v10 = vld [vmem:[%s6527_s1 + $0x210] sm:$0xff]  }
  0x4c   : > { %4761 = vmatprep.subr.bf16.mxu0 %v5177_v62 }
  0x4d   : > { %4792 = vmatpush3.bf16.msra.mxu1 %v5184_v18  ;;  %v5726_v18 = vsel %vm440_vm0, %v543_v12, %v547_v16  ;;  %v5210_v12 = vld [vmem:[%s6527_s1 + $0x198] sm:$0xff]  }
  0x4e   : > { %932 = vmatmul.mubr.bf16.gmra.mrb[8].mxu0 %v5576_v31  ;;  %4793 = vmatprep.subr.bf16.mxu1 %v5188_v28 }
  0x4f   : > { %939 = vmatprep.mubr.bf16.mxu0 %v5639_v11  ;;  %4762 = vmatpush3.bf16.msra.mxu0 %v5177_v62  ;;  %v535_v62 = vrot.slane %v533_v54, 1  ;;  %v5203_v54 = vld [vmem:[%s6527_s1 + $0x208] sm:$0xff]  }
  0x50   : > { %4763 = vmatprep.subr.bf16.mxu0 %v5182_v0  ;;  %1270 = vmatmul.mubr.bf16.gmra.mrb[8].mxu1 %v5564_v21 }
  0x51   : > { %1277 = vmatprep.mubr.bf16.mxu1 %v5614_v58  ;;  %4794 = vmatpush3.bf16.msra.mxu1 %v5188_v28  ;;  %v5716_v4 = vsel %vm440_vm0, %v531_v60, %v535_v62  ;;  %v3715_v28 = vcombine.low %v340_v22, %v5553_v8  ;;  %v609_v8 = vrot.slane %v5561_v20, 1  ;;  %v5201_v20 = vld [vmem:[%s6527_s1 + $0x1c8] sm:$0xff]   ;;  %v618_v62 = vrot.slane %v5620_v61, 1  ;;  %v5209_v61 = vld [vmem:[%s6527_s1 + $0x1d8] sm:$0xff]   ;;  %v5214_v22 = vld [vmem:[%s6527_s1 + $0x1e0] sm:$0xff]  }
  0x52   : > { %4795 = vmatprep.subr.bf16.mxu1 %v5189_v37 }
  0x53   : > { %4764 = vmatpush3.bf16.msra.mxu0 %v5182_v0  ;;  %v341_v0 = vld [vmem:[#allocation2 + $0xc] sm:$0xe]  ;;  %v602_v33 = vrot.slane %v3715_v28, 1 }
  0x54   : > { %4765 = vmatprep.subr.bf16.mxu0 %v5187_v24  ;;  %v3716_v19 = vcombine.low %v341_v0, %v5537_v63  ;;  %v621_v0 = vrot.slane %v5645_v17, 1 }
  0x55   : > { %4796 = vmatpush3.bf16.msra.mxu1 %v5189_v37  ;;  %v3718_v37 = vcombine.low %v343_v29, %v5566_v23  ;;  %v3719_v23 = vcombine.low %v344_v43, %v5588_v42  ;;  %v5216_v29 = vld [vmem:[%s6527_s1 + $0x220] sm:$0xff]   ;;  %v349_v43 = vld [vmem:[#allocation2 + $0x6c] sm:$0xe] }
  0x56   : > { %940 = vmatmul.mubr.bf16.gmra.mrb[12].mxu0 %v5591_v46  ;;  %4797 = vmatprep.subr.bf16.mxu1 %v5193_v48  ;;  %v605_v25 = vrot.slane %v3716_v19, 1  ;;  %v5211_v19 = vld [vmem:[%s6527_s1 + $0x218] sm:$0xff]  }
  0x57   : > { %947 = vmatprep.mubr.bf16.mxu0 %v5669_v35  ;;  %4766 = vmatpush3.bf16.msra.mxu0 %v5187_v24  ;;  %v342_v24 = vld [vmem:[#allocation2 + $0x18] sm:$0xe]  ;;  %v611_v40 = vrot.slane %v3718_v37, 1  ;;  %v614_v42 = vrot.slane %v3719_v23, 1  ;;  %v5222_v37 = vld [vmem:[%s6527_s1 + $0x1f0] sm:$0xff]  }
  0x58   : > { %4767 = vmatprep.subr.bf16.mxu0 %v5192_v34  ;;  %1278 = vmatmul.mubr.bf16.gmra.mrb[12].mxu1 %v5576_v31  ;;  %v3717_v30 = vcombine.low %v342_v24, %v5558_v14  ;;  %v607_v63 = vsel %vm601_vm1, %v605_v25, %v606_v26  ;;  %v624_v25 = vrot.slane %v5678_v39, 1  ;;  %v5215_v26 = vld [vmem:[%s6527_s1 + $0x1a0] sm:$0xff]   ;;  %v5217_v39 = vld [vmem:[%s6527_s1 + $0x1e8] sm:$0xff]  }
  0x59   : > { %1285 = vmatprep.mubr.bf16.mxu1 %v5639_v11  ;;  %4798 = vmatpush3.bf16.msra.mxu1 %v5193_v48  ;;  %v5755_v32 = vsel %vm601_vm1, %v611_v40, %v612_v41  ;;  %v5773_v2 = vsel %vm601_vm1, %v614_v42, %v615_v53  ;;  %v5226_v40 = vld [vmem:[%s6527_s1 + $0x1b8] sm:$0xff]  }
  0x5a   : > { %4799 = vmatprep.subr.bf16.mxu1 %v5194_v56  ;;  %v608_v1 = vrot.slane %v3717_v30, 1  ;;  %v5227_v41 = vld [vmem:[%s6527_s1 + $0x238] sm:$0xff]  }
  0x5b   : > { %4768 = vmatpush3.bf16.msra.mxu0 %v5192_v34  ;;  %v603_v34 = vrot.slane %v5556_v13, 1  ;;  %v5199_v13 = vld [vmem:[%s6527_s1 + $0x180] sm:$0xff]  }
  0x5c   : > { %4433 = vmatprep.subr.bf16.mxu0 %v5197_v45  ;;  %v5745_v14 = vsel %vm601_vm1, %v608_v1, %v609_v8  ;;  %v345_v45 = vld [vmem:[#allocation2 + $0x3c] sm:$0xe]  ;;  %v5224_v8 = vld [vmem:[%s6527_s1 + $0x230] sm:$0xff]  }
  0x5d   : > { %4800 = vmatpush3.bf16.msra.mxu1 %v5194_v56  ;;  %v604_v38 = vsel %vm601_vm1, %v602_v33, %v603_v34  ;;  %v3720_v48 = vcombine.low %v345_v45, %v5598_v50  ;;  %v5206_v56 = vld [vmem:[%s6527_s1 + $0x1d0] sm:$0xff]   ;;  %v346_v50 = vld [vmem:[#allocation2 + $0x48] sm:$0xe]  ;;  %v627_v33 = vrot.slane %v5704_v59, 1 }
  0x5e   : > { %948 = vmatmul.mubr.bf16.gmra.mrb[16].mxu0 %v5611_v57  ;;  %4817 = vmatprep.subr.bf16.mxu1 %v5711_v3  ;;  %v3721_v5 = vcombine.low %v346_v50, %v5627_v6  ;;  %v3722_v6 = vcombine.low %v347_v7, %v5656_v27  ;;  %v348_v27 = vld [vmem:[#allocation2 + $0x60] sm:$0xe]  ;;  %v5219_v34 = vld [vmem:[%s6527_s1 + $0x228] sm:$0xff]   ;;  %v5223_v59 = vld [vmem:[%s6527_s1 + $0x1b0] sm:$0xff]  }
  0x5f   : > { %955 = vmatprep.mubr.bf16.mxu0 %v5694_v52  ;;  %v617_v60 = vrot.slane %v3720_v48, 1  ;;  %v3723_v28 = vcombine.low %v348_v27, %v5682_v44  ;;  %v5218_v44 = vld [vmem:[%s6527_s1 + $0x1a8] sm:$0xff]  }
  0x60   : > { %1286 = vmatmul.mubr.bf16.gmra.mrb[16].mxu1 %v5591_v46  ;;  %v620_v16 = vrot.slane %v3721_v5, 1  ;;  %v623_v24 = vrot.slane %v3722_v6, 1 }
  0x61   : > { %1293 = vmatprep.mubr.bf16.mxu1 %v5669_v35 }
  0x62   : > { %v622_v17 = vsel %vm601_vm1, %v620_v16, %v621_v0  ;;  %v625_v30 = vsel %vm601_vm1, %v623_v24, %v624_v25 }
  0x66   : > { %956 = vmatmul.mubr.bf16.gmra.mrb[20].mxu0 %v5633_v9 }
  0x67   : > { %963 = vmatprep.mubr.bf16.mxu0 %v5716_v4 }
  0x68   : > { %1294 = vmatmul.mubr.bf16.gmra.mrb[20].mxu1 %v5611_v57 }
  0x69   : > { %1301 = vmatprep.mubr.bf16.mxu1 %v5694_v52 }
  0x6e   : > { %964 = vmatmul.mubr.bf16.gmra.mrb[24].mxu0 %v5672_v36 }
  0x6f   : > { %971 = vmatprep.mubr.bf16.mxu0 %v5726_v18 }
  0x70   : > { %1302 = vmatmul.mubr.bf16.gmra.mrb[24].mxu1 %v5633_v9 }
  0x71   : > { %1309 = vmatprep.mubr.bf16.mxu1 %v5716_v4 }
  0x76   : > { %972 = vmatmul.mubr.bf16.gmra.mrb[28].mxu0 %v5698_v55 }
  0x77   : > { %4769 = vmatprep.mubr.bf16.mxu0 %v607_v63 }
  0x78   : > { %1310 = vmatmul.mubr.bf16.gmra.mrb[28].mxu1 %v5672_v36 }
  0x79   : > { %4801 = vmatprep.mubr.bf16.mxu1 %v604_v38  ;;  %v5225_v38 = vld [vmem:[%s6527_s1 + $0x1f8] sm:$0xff]  }
  0x7e   : > { %4770 = vmatmul.mubr.bf16.vlgmr.msra.gmra.mrb[32].mxu0 %v5745_v14 }
  0x7f   : > { %4434 = vmatpush3.bf16.msra.mxu0 %v5199_v13  ;;  %4773 = vmatprep.mubr.bf16.mxu0 %v5755_v32 }
  0x80   : > { %4435 = vmatprep.subr.bf16.mxu0 %v5201_v20  ;;  %4802 = vmatmul.mubr.bf16.vlgmr.msra.gmra.mrb[32].mxu1 %v607_v63  ;;  %v626_v63 = vrot.slane %v3723_v28, 1 }
  0x81   : > { %4818 = vmatpush3.bf16.msra.mxu1 %v5711_v3  ;;  %4805 = vmatprep.mubr.bf16.mxu1 %v5745_v14  ;;  %v5788_v3 = vsel %vm601_vm1, %v617_v60, %v618_v62 }
  0x82   : > { %4819 = vmatprep.subr.bf16.mxu1 %v5203_v54  ;;  %v628_v1 = vsel %vm601_vm1, %v626_v63, %v627_v33 }
  0x83   : > { %4436 = vmatpush3.bf16.msra.mxu0 %v5202_v49 }
  0x84   : > { %4437 = vmatprep.subr.bf16.mxu0 %v5206_v56 }
  0x85   : > { %4820 = vmatpush3.bf16.msra.mxu1 %v5203_v54 }
  0x86   : > { %4774 = vmatmul.mubr.bf16.gmra.mrb[36].mxu0 %v5773_v2  ;;  %4821 = vmatprep.subr.bf16.mxu1 %v5208_v10 }
  0x87   : > { %4438 = vmatpush3.bf16.msra.mxu0 %v5207_v47  ;;  %4777 = vmatprep.mubr.bf16.mxu0 %v5788_v3 }
  0x88   : > { %4439 = vmatprep.subr.bf16.mxu0 %v5209_v61  ;;  %4806 = vmatmul.mubr.bf16.gmra.mrb[36].mxu1 %v5755_v32 }
  0x89   : > { %4822 = vmatpush3.bf16.msra.mxu1 %v5208_v10  ;;  %4809 = vmatprep.mubr.bf16.mxu1 %v5773_v2 }
  0x8a   : > { %4823 = vmatprep.subr.bf16.mxu1 %v5211_v19 }
  0x8b   : > { %4440 = vmatpush3.bf16.msra.mxu0 %v5210_v12 }
  0x8c   : > { %4441 = vmatprep.subr.bf16.mxu0 %v5214_v22 }
  0x8d   : > { %4824 = vmatpush3.bf16.msra.mxu1 %v5211_v19 }
  0x8e   : > { %4778 = vmatmul.mubr.bf16.gmra.mrb[40].mxu0 %v622_v17  ;;  %4825 = vmatprep.subr.bf16.mxu1 %v5216_v29 }
  0x8f   : > { %4442 = vmatpush3.bf16.msra.mxu0 %v5215_v26  ;;  %4781 = vmatprep.mubr.bf16.mxu0 %v625_v30 }
  0x90   : > { %4443 = vmatprep.subr.bf16.mxu0 %v5217_v39  ;;  %4810 = vmatmul.mubr.bf16.gmra.mrb[40].mxu1 %v5788_v3 }
  0x91   : > { %4826 = vmatpush3.bf16.msra.mxu1 %v5216_v29  ;;  %4813 = vmatprep.mubr.bf16.mxu1 %v622_v17 }
  0x92   : > { %4827 = vmatprep.subr.bf16.mxu1 %v5219_v34 }
  0x93   : > { %4444 = vmatpush3.bf16.msra.mxu0 %v5218_v44 }
  0x94   : > { %4445 = vmatprep.subr.bf16.mxu0 %v5222_v37 }
  0x95   : > { %4828 = vmatpush3.bf16.msra.mxu1 %v5219_v34 }
  0x96   : > { %4782 = vmatmul.mubr.bf16.gmra.mrb[44].mxu0 %v628_v1  ;;  %4829 = vmatprep.subr.bf16.mxu1 %v5224_v8 }
  0x97   : > { %4446 = vmatpush3.bf16.msra.mxu0 %v5223_v59  ;;  %1640 = vmatprep.mubr.bf16.mxu0 %v5601_v51  ;;  %v329_v51 = vld [vmem:[#allocation2 + $0x70] sm:$0xf] }
  0x98   : > { %4447 = vmatprep.subr.bf16.mxu0 %v5225_v38  ;;  %4814 = vmatmul.mubr.bf16.gmra.mrb[44].mxu1 %v625_v30 }
  0x99   : > { %4830 = vmatpush3.bf16.msra.mxu1 %v5224_v8  ;;  %4833 = vmatprep.mubr.bf16.mxu1 %v5745_v14  ;;  %v3724_v14 = vcombine.low %v349_v43, %v329_v51 }
  0x9a   : > { %4831 = vmatprep.subr.bf16.mxu1 %v5227_v41 }
  0x9b   : > { %4448 = vmatpush3.bf16.msra.mxu0 %v5226_v40 }
  0x9d   : > { %4832 = vmatpush3.bf16.msra.mxu1 %v5227_v41 }
  0x9e   : > { %1641 = vmatmul.mubr.bf16.vlgmr.msra.gmra.mrb[48].mxu0 %v5564_v21  ;;  %v5229_v21 = vld [vmem:[#allocation2 + $0x74] ss:$0 sps:$4 sm:$0x11]  }
  0x9f   : > { %1648 = vmatprep.mubr.bf16.mxu0 %v5614_v58  ;;  %v629_v58 = vrot.slane %v3724_v14, 1  ;;  %v630_v13 = vrot.slane %v5229_v21, 1  ;;  %v557_v20 = vshll.u32 %v5229_v21, 16 }
  0xa0   : > { %4834 = vmatmul.mubr.bf16.vlgmr.msra.gmra.mrb[32].mxu1 %v5755_v32 }
  0xa1   : > { %4837 = vmatprep.mubr.bf16.mxu1 %v5773_v2  ;;  %v559_v32 = vrot.slane %v557_v20, 1 }
  0xa6   : > { %1649 = vmatmul.mubr.bf16.gmra.mrb[52].mxu0 %v5576_v31  ;;  %v631_v31 = vsel %vm601_vm1, %v629_v58, %v630_v13 }
  0xa7   : > { %1656 = vmatprep.mubr.bf16.mxu0 %v5639_v11  ;;  %v328_v11 = vld [vmem:[#allocation2 + $0x6c] sm:$0xf] }
  0xa8   : > { %4838 = vmatmul.mubr.bf16.gmra.mrb[36].mxu1 %v5788_v3  ;;  %v3704_v23 = vcombine.low %v328_v11, %v329_v51 }
  0xa9   : > { %4841 = vmatprep.mubr.bf16.mxu1 %v622_v17 }
  0xae   : > { %1657 = vmatmul.mubr.bf16.gmra.mrb[56].mxu0 %v5591_v46  ;;  %v552_v46 = vshll.u32 %v3704_v23, 16 }
  0xaf   : > { %1664 = vmatprep.mubr.bf16.mxu0 %v5669_v35  ;;  %v550_v35 = vshrl.u32 %v3704_v23, 16 }
  0xb0   : > { %4842 = vmatmul.mubr.bf16.gmra.mrb[40].mxu1 %v625_v30  ;;  %v554_v45 = vrot.slane %v552_v46, 1 }
  0xb1   : > { %4845 = vmatprep.mubr.bf16.mxu1 %v628_v1 }
  0xb6   : > { %1665 = vmatmul.mubr.bf16.gmra.mrb[60].mxu0 %v5611_v57  ;;  %v555_v57 = vor.u32 %v554_v45, %v550_v35 }
  0xb7   : > { %1672 = vmatprep.mubr.bf16.mxu0 %v5694_v52 }
  0xb8   : > { %4846 = vmatmul.mubr.bf16.gmra.mrb[44].mxu1 %v631_v31  ;;  %v560_v48 = vsel %vm440_vm0, %v555_v57, %v559_v32 }
  0xbe   : > { %1673 = vmatmul.mubr.bf16.gmra.mrb[64].mxu0 %v5633_v9 }
  0xbf   : > { %1680 = vmatprep.mubr.bf16.mxu0 %v5716_v4 }
  0xc6   : > { %1681 = vmatmul.mubr.bf16.gmra.mrb[68].mxu0 %v5672_v36 }
  0xc7   : > { %1688 = vmatprep.mubr.bf16.mxu0 %v5726_v18 }
  0xce   : > { %1689 = vmatmul.mubr.bf16.gmra.mrb[72].mxu0 %v5698_v55 }
  0xcf   : > { %1696 = vmatprep.mubr.bf16.mxu0 %v560_v48 }
  0xd6   : > { %1697 = vmatmul.mubr.bf16.gmra.mrb[76].mxu0 %v3704_v23 }
 0x111   : > { %v4289_v52 = vpop.f32.mrb[0].mxu0 }
 0x112   : > { %v4290_v9 = vpop.f32.mrb[1].mxu0 }
 0x113   : > { %v5864_v49 = vadd.f32 %v4290_v9, %v4289_v52  ;;  %v4292_v4 = vpop.f32.mrb[2].mxu0  ;;  %v4369_v54 = vpop.f32.mrb[0].mxu1 }
 0x114   : > { %v4293_v42 = vpop.f32.mrb[3].mxu0  ;;  %v4370_v36 = vpop.f32.mrb[1].mxu1 }
 0x115   : > { %v5866_v53 = vadd.f32 %v4293_v42, %v4292_v4  ;;  %v5868_v56 = vadd.f32 %v4370_v36, %v4369_v54  ;;  %v4372_v18 = vpop.f32.mrb[2].mxu1 }
 0x116   : > { %v4373_v50 = vpop.f32.mrb[3].mxu1 }
 0x117   : > { %v5870_v62 = vadd.f32 %v4373_v50, %v4372_v18 }
 0x119   : > { %v4295_v60 = vpop.f32.mrb[4].mxu0 }
 0x11a   : > { %v4296_v55 = vpop.f32.mrb[5].mxu0 }
 0x11b   : > { %v5872_v2 = vadd.f32 %v4296_v55, %v4295_v60  ;;  %v4298_v47 = vpop.f32.mrb[6].mxu0  ;;  %v4375_v10 = vpop.f32.mrb[4].mxu1 }
 0x11c   : > { %v4299_v5 = vpop.f32.mrb[7].mxu0  ;;  %v4376_v61 = vpop.f32.mrb[5].mxu1 }
 0x11d   : > { %v5874_v7 = vadd.f32 %v4299_v5, %v4298_v47  ;;  %v5876_v3 = vadd.f32 %v4376_v61, %v4375_v10  ;;  %v4378_v6 = vpop.f32.mrb[6].mxu1 }
 0x11e   : > { %v4379_v12 = vpop.f32.mrb[7].mxu1 }
 0x11f   : > { %v5878_v0 = vadd.f32 %v4379_v12, %v4378_v6 }
 0x121   : > { %v4301_v16 = vpop.f32.mrb[8].mxu0 }
 0x122   : > { %v4302_v19 = vpop.f32.mrb[9].mxu0 }
 0x123   : > { %v5880_v22 = vadd.f32 %v4302_v19, %v4301_v16  ;;  %v4304_v27 = vpop.f32.mrb[10].mxu0  ;;  %v4381_v17 = vpop.f32.mrb[8].mxu1 }
 0x124   : > { %v4305_v24 = vpop.f32.mrb[11].mxu0  ;;  %v4382_v26 = vpop.f32.mrb[9].mxu1 }
 0x125   : > { %v5882_v25 = vadd.f32 %v4305_v24, %v4304_v27  ;;  %v5884_v28 = vadd.f32 %v4382_v26, %v4381_v17  ;;  %v4384_v29 = vpop.f32.mrb[10].mxu1 }
 0x126   : > { %v4385_v39 = vpop.f32.mrb[11].mxu1 }
 0x127   : > { %v5886_v44 = vadd.f32 %v4385_v39, %v4384_v29 }
 0x129   : > { %v4307_v30 = vpop.f32.mrb[12].mxu0 }
 0x12a   : > { %v4308_v63 = vpop.f32.mrb[13].mxu0 }
 0x12b   : > { %v5888_v33 = vadd.f32 %v4308_v63, %v4307_v30  ;;  %v4310_v34 = vpop.f32.mrb[14].mxu0  ;;  %v4387_v59 = vpop.f32.mrb[12].mxu1 }
 0x12c   : > { %v4311_v37 = vpop.f32.mrb[15].mxu0  ;;  %v4388_v8 = vpop.f32.mrb[13].mxu1 }
 0x12d   : > { %v5890_v1 = vadd.f32 %v4311_v37, %v4310_v34  ;;  %v5892_v38 = vadd.f32 %v4388_v8, %v4387_v59  ;;  %v4390_v40 = vpop.f32.mrb[14].mxu1 }
 0x12e   : > { %v4391_v41 = vpop.f32.mrb[15].mxu1 }
 0x12f   : > { %v5894_v43 = vadd.f32 %v4391_v41, %v4390_v40 }
 0x131   : > { %v4313_v51 = vpop.f32.mrb[16].mxu0 }
 0x132   : > { %v4314_v21 = vpop.f32.mrb[17].mxu0 }
 0x133   : > { %v5896_v14 = vadd.f32 %v4314_v21, %v4313_v51  ;;  %v4316_v58 = vpop.f32.mrb[18].mxu0  ;;  %v4393_v11 = vpop.f32.mrb[16].mxu1 }
 0x134   : > { %v4317_v13 = vpop.f32.mrb[19].mxu0  ;;  %v4394_v23 = vpop.f32.mrb[17].mxu1 }
 0x135   : > { %v5898_v31 = vadd.f32 %v4317_v13, %v4316_v58  ;;  %v5900_v46 = vadd.f32 %v4394_v23, %v4393_v11  ;;  %v4396_v35 = vpop.f32.mrb[18].mxu1 }
 0x136   : > { %v4397_v45 = vpop.f32.mrb[19].mxu1 }
 0x137   : > { %v5902_v57 = vadd.f32 %v4397_v45, %v4396_v35 }
 0x139   : > { %v4319_v20 = vpop.f32.mrb[20].mxu0 }
 0x13a   : > { %v4320_v32 = vpop.f32.mrb[21].mxu0 }
 0x13b   : > { %v4321_v48 = vadd.f32 %v4320_v32, %v4319_v20  ;;  %v4322_v52 = vpop.f32.mrb[22].mxu0  ;;  %v4399_v42 = vpop.f32.mrb[20].mxu1 }
 0x13c   : > { %v4323_v9 = vpop.f32.mrb[23].mxu0  ;;  %v4400_v54 = vpop.f32.mrb[21].mxu1 }
 0x13d   : > { %v4324_v4 = vadd.f32 %v4323_v9, %v4322_v52  ;;  %v4401_v36 = vadd.f32 %v4400_v54, %v4399_v42  ;;  %v4402_v18 = vpop.f32.mrb[22].mxu1 }
 0x13e   : > { %v4403_v50 = vpop.f32.mrb[23].mxu1 }
 0x13f   : > { %v4404_v55 = vadd.f32 %v4403_v50, %v4402_v18 }
 0x141   : > { %v4325_v60 = vpop.f32.mrb[24].mxu0 }
 0x142   : > { %v4326_v47 = vpop.f32.mrb[25].mxu0 }
 0x143   : > { %v4327_v5 = vadd.f32 %v4326_v47, %v4325_v60  ;;  %v4328_v10 = vpop.f32.mrb[26].mxu0  ;;  %v4405_v12 = vpop.f32.mrb[24].mxu1 }
 0x144   : > { %v4329_v61 = vpop.f32.mrb[27].mxu0  ;;  %v4406_v16 = vpop.f32.mrb[25].mxu1 }
 0x145   : > { %v5904_v6 = vadd.f32 %v4329_v61, %v4328_v10  ;;  %v4407_v19 = vadd.f32 %v4406_v16, %v4405_v12  ;;  %v4408_v27 = vpop.f32.mrb[26].mxu1 }
 0x146   : > { %v4409_v24 = vpop.f32.mrb[27].mxu1 }
 0x147   : > { %v4410_v26 = vadd.f32 %v4409_v24, %v4408_v27 }
 0x149   : > { %v4331_v17 = vpop.f32.mrb[28].mxu0 }
 0x14a   : > { %v4332_v29 = vpop.f32.mrb[29].mxu0 }
 0x14b   : > { %v4333_v39 = vadd.f32 %v4332_v29, %v4331_v17  ;;  %v4334_v30 = vpop.f32.mrb[30].mxu0  ;;  %v4411_v37 = vpop.f32.mrb[28].mxu1 }
 0x14c   : > { %v4335_v63 = vpop.f32.mrb[31].mxu0  ;;  %v4412_v59 = vpop.f32.mrb[29].mxu1 }
 0x14d   : > { %v4336_v34 = vadd.f32 %v4335_v63, %v4334_v30  ;;  %v4413_v8 = vadd.f32 %v4412_v59, %v4411_v37  ;;  %v4414_v40 = vpop.f32.mrb[30].mxu1 }
 0x14e   : > { %v4415_v41 = vpop.f32.mrb[31].mxu1 }
 0x14f   : > { %v4416_v21 = vadd.f32 %v4415_v41, %v4414_v40 }
 0x151   : > { %v4771_v51 = vpop.f32.mrb[32].mxu0 }
 0x152   : > { %v1023_v58 = vadd.f32 %v4771_v51, %v5872_v2  ;;  %v1014_v13 = vpop.f32.mrb[33].mxu0 }
 0x153   : > { %v1015_v11 = vadd.f32 %v5864_v49, %v1014_v13  ;;  %v4772_v23 = vpop.f32.mrb[34].mxu0 }
 0x154   : > { %v5909_v35 = vadd.f32 %v5876_v3, %v1023_v58  ;;  %v1026_v45 = vadd.f32 %v4772_v23, %v5874_v7  ;;  %v1017_v20 = vpop.f32.mrb[35].mxu0 }
 0x155   : > { %v1256_v32 = vadd.f32 %v5868_v56, %v1015_v11  ;;  %v1018_v52 = vadd.f32 %v5866_v53, %v1017_v20 }
 0x156   : > { %v5915_v9 = vadd.f32 %v5878_v0, %v1026_v45 }
 0x157   : > { %v1259_v42 = vadd.f32 %v5870_v62, %v1018_v52 }
 0x159   : > { %v4775_v2 = vpop.f32.mrb[36].mxu0 }
 0x15a   : > { %v1039_v54 = vadd.f32 %v4775_v2, %v5888_v33  ;;  %v1030_v49 = vpop.f32.mrb[37].mxu0 }
 0x15b   : > { %v1031_v18 = vadd.f32 %v5880_v22, %v1030_v49  ;;  %v4776_v3 = vpop.f32.mrb[38].mxu0 }
 0x15c   : > { %v5921_v50 = vadd.f32 %v5892_v38, %v1039_v54  ;;  %v1042_v7 = vadd.f32 %v4776_v3, %v5890_v1  ;;  %v1033_v56 = vpop.f32.mrb[39].mxu0 }
 0x15d   : > { %v5925_v53 = vadd.f32 %v5884_v28, %v1031_v18  ;;  %v1034_v0 = vadd.f32 %v5882_v25, %v1033_v56 }
 0x15e   : > { %v5929_v62 = vadd.f32 %v5894_v43, %v1042_v7 }
 0x15f   : > { %v5932_v33 = vadd.f32 %v5886_v44, %v1034_v0 }
 0x161   : > { %v4779_v60 = vpop.f32.mrb[40].mxu0 }
 0x162   : > { %v1055_v22 = vadd.f32 %v4779_v60, %v4321_v48  ;;  %v1046_v47 = vpop.f32.mrb[41].mxu0 }
 0x163   : > { %v1047_v38 = vadd.f32 %v5896_v14, %v1046_v47  ;;  %v4780_v10 = vpop.f32.mrb[42].mxu0 }
 0x164   : > { %v5935_v61 = vadd.f32 %v4401_v36, %v1055_v22  ;;  %v1058_v1 = vadd.f32 %v4780_v10, %v4324_v4  ;;  %v1049_v12 = vpop.f32.mrb[43].mxu0 }
 0x165   : > { %v5938_v28 = vadd.f32 %v5900_v46, %v1047_v38  ;;  %v1050_v25 = vadd.f32 %v5898_v31, %v1049_v12 }
 0x166   : > { %v5941_v43 = vadd.f32 %v4404_v55, %v1058_v1 }
 0x167   : > { %v5944_v44 = vadd.f32 %v5902_v57, %v1050_v25 }
 0x169   : > { %v4783_v16 = vpop.f32.mrb[44].mxu0 }
 0x16a   : > { %v1071_v48 = vadd.f32 %v4783_v16, %v4333_v39  ;;  %v1062_v27 = vpop.f32.mrb[45].mxu0 }
 0x16b   : > { %v1063_v24 = vadd.f32 %v4327_v5, %v1062_v27  ;;  %v4784_v14 = vpop.f32.mrb[46].mxu0 }
 0x16c   : > { %v5946_v17 = vadd.f32 %v4413_v8, %v1071_v48  ;;  %v1074_v36 = vadd.f32 %v4784_v14, %v4336_v34  ;;  %v1065_v4 = vpop.f32.mrb[47].mxu0 }
 0x16d   : > { %v5948_v29 = vadd.f32 %v4407_v19, %v1063_v24  ;;  %v1066_v46 = vadd.f32 %v5904_v6, %v1065_v4 }
 0x16e   : > { %v5951_v30 = vadd.f32 %v4416_v21, %v1074_v36 }
 0x16f   : > { %v5953_v31 = vadd.f32 %v4410_v26, %v1066_v46 }
 0x171   : > { %v4449_v55 = vpop.f32.mrb[48].mxu0 }
 0x172   : > { %v4450_v57 = vpop.f32.mrb[49].mxu0 }
 0x173   : > { %v4451_v63 = vadd.f32 %v4450_v57, %v4449_v55  ;;  %v4452_v37 = vpop.f32.mrb[50].mxu0  ;;  %v4835_v59 = vpop.f32.mrb[32].mxu1 }
 0x174   : > { %v4453_v39 = vpop.f32.mrb[51].mxu0  ;;  %v1739_v8 = vpop.f32.mrb[33].mxu1 }
 0x175   : > { %v4454_v5 = vadd.f32 %v4453_v39, %v4452_v37  ;;  %v4951_v40 = vadd.f32 %v4451_v63, %v1256_v32  ;;  %v4836_v34 = vpop.f32.mrb[34].mxu1 }
 0x176   : > { %v1742_v19 = vpop.f32.mrb[35].mxu1 }
 0x177   : > { %v4952_v41 = vadd.f32 %v4951_v40, %v1739_v8  ;;  %v4959_v51 = vadd.f32 %v4454_v5, %v1259_v42 }
 0x179   : > { %v1824_v58 = vadd.f32 %v4952_v41, %v5427_v15  ;;  %v4960_v6 = vadd.f32 %v4959_v51, %v1742_v19  ;;  %v4455_v21 = vpop.f32.mrb[52].mxu0 }
 0x17a   : > { %v4456_v13 = vpop.f32.mrb[53].mxu0 }
 0x17b   : > { %v1825_v26 = vadd.f32 %v4960_v6, %v5427_v15  ;;  %v4457_v11 = vadd.f32 %v4456_v13, %v4455_v21  ;;  %v4458_v23 = vpop.f32.mrb[54].mxu0  ;;  %v1840_v20 = vmax.f32 %v1824_v58, 0.0  ;;  %v4839_v2 = vpop.f32.mrb[36].mxu1 }
 0x17c   : > { %v4459_v45 = vpop.f32.mrb[55].mxu0  ;;  %v1755_v49 = vpop.f32.mrb[37].mxu1 }
 0x17d   : > { %v1841_v52 = vmax.f32 %v1825_v26, 0.0  ;;  %v4947_v32 = vadd.f32 %v4457_v11, %v5909_v35  ;;  %v4460_v54 = vadd.f32 %v4459_v45, %v4458_v23  ;;  %v4840_v7 = vpop.f32.mrb[38].mxu1 }
 0x17e   : > { %v1758_v56 = vpop.f32.mrb[39].mxu1 }
 0x17f   : > { %v4181_v42 = vpack.c.bf16 %v1841_v52, %v1840_v20  ;;  %v4948_v18 = vadd.f32 %v4947_v32, %v4835_v59  ;;  %v4955_v3 = vadd.f32 %v4460_v54, %v5915_v9 }
 0x181   : > { %4182 = vst [vmem:[%s5410_s23] sm:$0xff] %v4181_v42   ;;  %v1826_v0 = vadd.f32 %v4948_v18, %v5427_v15  ;;  %v4956_v60 = vadd.f32 %v4955_v3, %v4836_v34  ;;  %v4461_v22 = vpop.f32.mrb[56].mxu0 }
 0x182   : > { %v4462_v47 = vpop.f32.mrb[57].mxu0 }
 0x183   : > { %v1827_v38 = vadd.f32 %v4956_v60, %v5427_v15  ;;  %v4463_v10 = vadd.f32 %v4462_v47, %v4461_v22  ;;  %v4464_v35 = vpop.f32.mrb[58].mxu0  ;;  %v1842_v12 = vmax.f32 %v1826_v0, 0.0  ;;  %v4843_v48 = vpop.f32.mrb[40].mxu1 }
 0x184   : > { %v4465_v1 = vpop.f32.mrb[59].mxu0  ;;  %v1771_v27 = vpop.f32.mrb[41].mxu1 }
 0x185   : > { %v1843_v25 = vmax.f32 %v1827_v38, 0.0  ;;  %v4967_v16 = vadd.f32 %v4463_v10, %v5925_v53  ;;  %v4466_v9 = vadd.f32 %v4465_v1, %v4464_v35  ;;  %v4844_v4 = vpop.f32.mrb[42].mxu1 }
 0x186   : > { %v1774_v46 = vpop.f32.mrb[43].mxu1 }
 0x187   : > { %v4186_v24 = vpack.c.bf16 %v1843_v25, %v1842_v12  ;;  %v4968_v14 = vadd.f32 %v4967_v16, %v1755_v49  ;;  %v4975_v36 = vadd.f32 %v4466_v9, %v5932_v33 }
 0x189   : > { %4258 = vst [vmem:[%s5410_s23 + $0x8] sm:$0xff] %v4186_v24   ;;  %v1828_v55 = vadd.f32 %v4968_v14, %v5427_v15  ;;  %v4976_v57 = vadd.f32 %v4975_v36, %v1758_v56  ;;  %v4467_v63 = vpop.f32.mrb[60].mxu0 }
 0x18a   : > { %v4468_v37 = vpop.f32.mrb[61].mxu0 }
 0x18b   : > { %v1829_v39 = vadd.f32 %v4976_v57, %v5427_v15  ;;  %v4469_v59 = vadd.f32 %v4468_v37, %v4467_v63  ;;  %v4470_v53 = vpop.f32.mrb[62].mxu0  ;;  %v1844_v40 = vmax.f32 %v1828_v55, 0.0  ;;  %v5968_v34 = vpop.f32.mrb[44].mxu1 }
 0x18c   : > { %v4471_v5 = vpop.f32.mrb[63].mxu0  ;;  %v1787_v51 = vpop.f32.mrb[45].mxu1 }
 0x18d   : > { %v1845_v8 = vmax.f32 %v1829_v39, 0.0  ;;  %v4963_v41 = vadd.f32 %v4469_v59, %v5921_v50  ;;  %v4472_v33 = vadd.f32 %v4471_v5, %v4470_v53  ;;  %v5971_v21 = vpop.f32.mrb[46].mxu1 }
 0x18e   : > { %v1790_v13 = vpop.f32.mrb[47].mxu1 }
 0x18f   : > { %v4191_v19 = vpack.c.bf16 %v1845_v8, %v1844_v40  ;;  %v4964_v58 = vadd.f32 %v4963_v41, %v4839_v2  ;;  %v4971_v6 = vadd.f32 %v4472_v33, %v5929_v62 }
 0x191   : > { %4259 = vst [vmem:[%s5410_s23 + $0x10] sm:$0xff] %v4191_v19   ;;  %v1830_v26 = vadd.f32 %v4964_v58, %v5427_v15  ;;  %v4972_v11 = vadd.f32 %v4971_v6, %v4840_v7  ;;  %v4473_v23 = vpop.f32.mrb[64].mxu0 }
 0x192   : > { %v4474_v45 = vpop.f32.mrb[65].mxu0 }
 0x193   : > { %v1831_v50 = vadd.f32 %v4972_v11, %v5427_v15  ;;  %v4475_v20 = vadd.f32 %v4474_v45, %v4473_v23  ;;  %v4476_v52 = vpop.f32.mrb[66].mxu0  ;;  %v1846_v54 = vmax.f32 %v1830_v26, 0.0 }
 0x194   : > { %v4477_v32 = vpop.f32.mrb[67].mxu0 }
 0x195   : > { %v1847_v49 = vmax.f32 %v1831_v50, 0.0  ;;  %v4983_v2 = vadd.f32 %v4475_v20, %v5938_v28  ;;  %v4478_v62 = vadd.f32 %v4477_v32, %v4476_v52 }
 0x197   : > { %v4196_v42 = vpack.c.bf16 %v1847_v49, %v1846_v54  ;;  %v4984_v18 = vadd.f32 %v4983_v2, %v1771_v27  ;;  %v4991_v3 = vadd.f32 %v4478_v62, %v5944_v44 }
 0x199   : > { %4260 = vst [vmem:[%s5410_s23 + $0x18] sm:$0xff] %v4196_v42   ;;  %v1832_v7 = vadd.f32 %v4984_v18, %v5427_v15  ;;  %v4992_v56 = vadd.f32 %v4991_v3, %v1774_v46  ;;  %v4479_v0 = vpop.f32.mrb[68].mxu0 }
 0x19a   : > { %v4480_v60 = vpop.f32.mrb[69].mxu0 }
 0x19b   : > { %v1833_v22 = vadd.f32 %v4992_v56, %v5427_v15  ;;  %v4481_v47 = vadd.f32 %v4480_v60, %v4479_v0  ;;  %v4482_v38 = vpop.f32.mrb[70].mxu0  ;;  %v1848_v35 = vmax.f32 %v1832_v7, 0.0 }
 0x19c   : > { %v4483_v10 = vpop.f32.mrb[71].mxu0 }
 0x19d   : > { %v1849_v1 = vmax.f32 %v1833_v22, 0.0  ;;  %v4979_v28 = vadd.f32 %v4481_v47, %v5935_v61  ;;  %v4484_v12 = vadd.f32 %v4483_v10, %v4482_v38 }
 0x19f   : > { %v4201_v25 = vpack.c.bf16 %v1849_v1, %v1848_v35  ;;  %v4980_v16 = vadd.f32 %v4979_v28, %v4843_v48  ;;  %v4987_v44 = vadd.f32 %v4484_v12, %v5941_v43 }
 0x1a1   : > { %4261 = vst [vmem:[%s5410_s23 + $0x20] sm:$0xff] %v4201_v25   ;;  %v1834_v9 = vadd.f32 %v4980_v16, %v5427_v15  ;;  %v4988_v27 = vadd.f32 %v4987_v44, %v4844_v4  ;;  %v4485_v24 = vpop.f32.mrb[72].mxu0 }
 0x1a2   : > { %v4486_v14 = vpop.f32.mrb[73].mxu0 }
 0x1a3   : > { %v1835_v36 = vadd.f32 %v4988_v27, %v5427_v15  ;;  %v4487_v46 = vadd.f32 %v4486_v14, %v4485_v24  ;;  %v4488_v55 = vpop.f32.mrb[74].mxu0  ;;  %v1850_v63 = vmax.f32 %v1834_v9, 0.0 }
 0x1a4   : > { %v4489_v57 = vpop.f32.mrb[75].mxu0 }
 0x1a5   : > { %v1851_v37 = vmax.f32 %v1835_v36, 0.0  ;;  %v4999_v61 = vadd.f32 %v4487_v46, %v5948_v29  ;;  %v4490_v39 = vadd.f32 %v4489_v57, %v4488_v55 }
 0x1a7   : > { %v4206_v48 = vpack.c.bf16 %v1851_v37, %v1850_v63  ;;  %v5000_v59 = vadd.f32 %v4999_v61, %v1787_v51  ;;  %v5007_v43 = vadd.f32 %v4490_v39, %v5953_v31 }
 0x1a9   : > { %4262 = vst [vmem:[%s5410_s23 + $0x28] sm:$0xff] %v4206_v48   ;;  %v1836_v4 = vadd.f32 %v5000_v59, %v5427_v15  ;;  %v5008_v53 = vadd.f32 %v5007_v43, %v1790_v13  ;;  %v4491_v5 = vpop.f32.mrb[76].mxu0 }
 0x1aa   : > { %v4492_v40 = vpop.f32.mrb[77].mxu0 }
 0x1ab   : > { %v1837_v8 = vadd.f32 %v5008_v53, %v5427_v15  ;;  %v4493_v41 = vadd.f32 %v4492_v40, %v4491_v5  ;;  %v4494_v33 = vpop.f32.mrb[78].mxu0  ;;  %v1852_v58 = vmax.f32 %v1836_v4, 0.0 }
 0x1ac   : > { %v4495_v19 = vpop.f32.mrb[79].mxu0 }
 0x1ad   : > { %v1853_v29 = vmax.f32 %v1837_v8, 0.0  ;;  %v4995_v6 = vadd.f32 %v4493_v41, %v5946_v17  ;;  %v4496_v51 = vadd.f32 %v4495_v19, %v4494_v33 }
 0x1af   : > { %v4211_v26 = vpack.c.bf16 %v1853_v29, %v1852_v58  ;;  %v4996_v31 = vadd.f32 %v4995_v6, %v5968_v34  ;;  %v5003_v11 = vadd.f32 %v4496_v51, %v5951_v30 }
 0x1b1   : > { %4263 = vst [vmem:[%s5410_s23 + $0x30] sm:$0xff] %v4211_v26   ;;  %v1838_v13 = vadd.f32 %v4996_v31, %v5427_v15  ;;  %v5004_v23 = vadd.f32 %v5003_v11, %v5971_v21 }
 0x1b3   : > { %v1839_v45 = vadd.f32 %v5004_v23, %v5427_v15  ;;  %v1854_v50 = vmax.f32 %v1838_v13, 0.0 }
 0x1b5   : > { %v1855_v20 = vmax.f32 %v1839_v45, 0.0 }
 0x1b7   : > { %v4216_v52 = vpack.c.bf16 %v1855_v20, %v1854_v50 }
 0x1b9   : > { %4264 = vst [vmem:[%s5410_s23 + $0x38] sm:$0xff] %v4216_v52  }
 0x1ba   : > { %5347 = dma.done.wait [#allocation3 + $0x1], 1920 }
 0x1bb   : > { %5348 = vsyncadd [#allocation3 + $0x1], 4294965376  ;;  %v5231_v17 = vld [vmem:[%s6527_s1 + $0x100] sm:$0xff]   ;;  %v5234_v21 = vld [vmem:[%s6527_s1 + $0x108] sm:$0xff]  }
 0x1bc   : > { %v5232_v30 = vld [vmem:[%s6527_s1 + $0x140] sm:$0xff]   ;;  %4513 = vmatprep.subr.bf16.mxu0 %v5231_v17  ;;  %v5235_v32 = vld [vmem:[%s6527_s1 + $0x148] sm:$0xff]   ;;  %v5237_v49 = vld [vmem:[%s6527_s1 + $0x110] sm:$0xff]  }
 0x1bd   : > { %v5233_v34 = vld [vmem:[%s6527_s1 + $0xc0] sm:$0xff]   ;;  %4849 = vmatprep.subr.bf16.mxu1 %v5232_v30  ;;  %v5236_v54 = vld [vmem:[%s6527_s1 + $0xc8] sm:$0xff]   ;;  %v5238_v2 = vld [vmem:[%s6527_s1 + $0x150] sm:$0xff]  }
 0x1be   : > { %4514 = vmatpush3.bf16.msra.mxu0 %v5233_v34  ;;  %4850 = vmatpush3.bf16.msra.mxu1 %v5232_v30  ;;  %v5239_v62 = vld [vmem:[%s6527_s1 + $0xd0] sm:$0xff]   ;;  %v5240_v42 = vld [vmem:[%s6527_s1 + $0x118] sm:$0xff]   ;;  %v5243_v7 = vld [vmem:[%s6527_s1 + $0x120] sm:$0xff]  }
 0x1bf   : > { %4515 = vmatprep.subr.bf16.mxu0 %v5234_v21  ;;  %4851 = vmatprep.subr.bf16.mxu1 %v5235_v32  ;;  %v5241_v18 = vld [vmem:[%s6527_s1 + $0x158] sm:$0xff]   ;;  %v5244_v56 = vld [vmem:[%s6527_s1 + $0x160] sm:$0xff]   ;;  %v5246_v60 = vld [vmem:[%s6527_s1 + $0x128] sm:$0xff]  }
 0x1c0   : > { %v5242_v3 = vld [vmem:[%s6527_s1 + $0xd8] sm:$0xff]   ;;  %v5245_v0 = vld [vmem:[%s6527_s1 + $0xe0] sm:$0xff]   ;;  %v5247_v22 = vld [vmem:[%s6527_s1 + $0x168] sm:$0xff]  }
 0x1c1   : > { %v5248_v47 = vld [vmem:[%s6527_s1 + $0xe8] sm:$0xff]   ;;  %v5249_v38 = vld [vmem:[%s6527_s1 + $0x130] sm:$0xff]   ;;  %v5252_v1 = vld [vmem:[%s6527_s1 + $0x138] sm:$0xff]  }
 0x1c2   : > { %4516 = vmatpush3.bf16.msra.mxu0 %v5236_v54  ;;  %4852 = vmatpush3.bf16.msra.mxu1 %v5235_v32  ;;  %v5250_v10 = vld [vmem:[%s6527_s1 + $0x170] sm:$0xff]   ;;  %v1940_v28 = vld [vmem:[#allocation2 + $0x84] sm:$0xf]  ;;  %v1941_v12 = vld [vmem:[#allocation2 + $0x88] sm:$0xf] }
 0x1c3   : > { %4517 = vmatprep.subr.bf16.mxu0 %v5237_v49  ;;  %4853 = vmatprep.subr.bf16.mxu1 %v5238_v2  ;;  %v5251_v35 = vld [vmem:[%s6527_s1 + $0xf0] sm:$0xff]   ;;  %v5253_v25 = vld [vmem:[%s6527_s1 + $0x178] sm:$0xff]   ;;  %v6068_v16 = vcombine.low %v1940_v28, %v1941_v12  ;;  %v5256_v44 = vld [vmem:[#allocation2 + $0x8c] ss:$0 sps:$4 sm:$0x11]  }
 0x1c4   : > { %v1969_v9 = vld [vmem:[#allocation2 + $0x84] sm:$0xe]  ;;  %v5254_v27 = vld [vmem:[%s6527_s1 + $0xf8] sm:$0xff]   ;;  %v1942_v14 = vld [vmem:[#allocation2 + $0x90] sm:$0xf]  ;;  %v2088_v57 = vshll.u32 %v5256_v44, 16 }
 0x1c5   : > { %v3931_v24 = vcombine.low %v1969_v9, %v1941_v12  ;;  %v1943_v36 = vld [vmem:[#allocation2 + $0x94] sm:$0xf]  ;;  %v2081_v46 = vshrl.u32 %v6068_v16, 16  ;;  %v2083_v55 = vshll.u32 %v6068_v16, 16  ;;  %v2232_v63 = vrot.slane %v5256_v44, 1  ;;  %v5261_v61 = vld [vmem:[%s6527_s1 + $0x80] sm:$0xff]  }
 0x1c6   : > { %4518 = vmatpush3.bf16.msra.mxu0 %v5239_v62  ;;  %4854 = vmatpush3.bf16.msra.mxu1 %v5238_v2  ;;  %v1970_v37 = vld [vmem:[#allocation2 + $0x90] sm:$0xe]  ;;  %v6078_v48 = vcombine.low %v1942_v14, %v1943_v36  ;;  %v5259_v59 = vld [vmem:[#allocation2 + $0x98] ss:$0 sps:$4 sm:$0x11]   ;;  %v2090_v53 = vrot.slane %v2088_v57, 1 }
 0x1c7   : > { %4519 = vmatprep.subr.bf16.mxu0 %v5240_v42  ;;  %4855 = vmatprep.subr.bf16.mxu1 %v5241_v18  ;;  %v2231_v39 = vrot.slane %v3931_v24, 1  ;;  %v3932_v43 = vcombine.low %v1970_v37, %v1943_v36  ;;  %v2085_v4 = vrot.slane %v2083_v55, 1  ;;  %v2235_v8 = vrot.slane %v5259_v59, 1  ;;  %v1944_v29 = vld [vmem:[#allocation2 + $0x9c] sm:$0xf]  ;;  %v5262_v11 = vld [vmem:[%s6527_s1 + $0x88] sm:$0xff]  }
 0x1c8   : > { %v2093_v41 = vshrl.u32 %v6078_v48, 16  ;;  %v2095_v19 = vshll.u32 %v6078_v48, 16  ;;  %v2100_v58 = vshll.u32 %v5259_v59, 16  ;;  %v1945_v6 = vld [vmem:[#allocation2 + $0xa0] sm:$0xf] }
 0x1c9   : > { %v6081_v5 = vsel %vm601_vm1, %v2231_v39, %v2232_v63  ;;  %v2234_v40 = vrot.slane %v3932_v43, 1  ;;  %v2086_v33 = vor.u32 %v2085_v4, %v2081_v46  ;;  %v1971_v26 = vld [vmem:[#allocation2 + $0x9c] sm:$0xe]  ;;  %v5264_v45 = vld [vmem:[#allocation2 + $0xa4] ss:$0 sps:$4 sm:$0x11]   ;;  %v6096_v20 = vcombine.low %v1944_v29, %v1945_v6 }
 0x1ca   : > { %4520 = vmatpush3.bf16.msra.mxu0 %v5242_v3  ;;  %4856 = vmatpush3.bf16.msra.mxu1 %v5241_v18  ;;  %v2097_v13 = vrot.slane %v2095_v19, 1  ;;  %v2102_v23 = vrot.slane %v2100_v58, 1  ;;  %v3933_v50 = vcombine.low %v1971_v26, %v1945_v6  ;;  %v1947_v52 = vld [vmem:[#allocation2 + $0xac] sm:$0xf]  ;;  %v1972_v17 = vld [vmem:[#allocation2 + $0xa8] sm:$0xe] }
 0x1cb   : > { %4521 = vmatprep.subr.bf16.mxu0 %v5243_v7  ;;  %4857 = vmatprep.subr.bf16.mxu1 %v5244_v56  ;;  %v6087_v51 = vsel %vm601_vm1, %v2234_v40, %v2235_v8  ;;  %v6090_v31 = vsel %vm440_vm0, %v2086_v33, %v2090_v53  ;;  %v2238_v21 = vrot.slane %v5264_v45, 1  ;;  %v5267_v32 = vld [vmem:[#allocation2 + $0xb0] ss:$0 sps:$4 sm:$0x11]   ;;  %v3934_v54 = vcombine.low %v1972_v17, %v1947_v52  ;;  %v1946_v62 = vld [vmem:[#allocation2 + $0xa8] sm:$0xf] }
 0x1cc   : > { %4865 = vmatprep.mubr.bf16.mxu1 %v6081_v5  ;;  %2540 = vmatprep.mubr.bf16.mxu0 %v6090_v31  ;;  %v2098_v30 = vor.u32 %v2097_v13, %v2093_v41  ;;  %v2237_v34 = vrot.slane %v3933_v50, 1  ;;  %v2241_v42 = vrot.slane %v5267_v32, 1  ;;  %v5269_v18 = vld [vmem:[%s6527_s1 + $0x90] sm:$0xff]   ;;  %v2105_v7 = vshrl.u32 %v6096_v20, 16  ;;  %v1974_v44 = vld [vmem:[#allocation2 + $0xc0] sm:$0xe] }
 0x1cd   : > { %v2240_v3 = vrot.slane %v3934_v54, 1  ;;  %v6121_v12 = vcombine.low %v1946_v62, %v1947_v52  ;;  %v6126_v14 = vld [vmem:[#allocation2 + $0xc8] ss:$0 sps:$4 sm:$0x11]   ;;  %v1948_v36 = vld [vmem:[#allocation2 + $0xb4] sm:$0xf] }
 0x1ce   : > { %4522 = vmatpush3.bf16.msra.mxu0 %v5245_v0  ;;  %4858 = vmatpush3.bf16.msra.mxu1 %v5244_v56  ;;  %v6101_v49 = vsel %vm440_vm0, %v2098_v30, %v2102_v23  ;;  %v6104_v2 = vsel %vm601_vm1, %v2237_v34, %v2238_v21  ;;  %v2107_v56 = vshll.u32 %v6096_v20, 16  ;;  %v2112_v0 = vshll.u32 %v5264_v45, 16  ;;  %v5277_v37 = vld [vmem:[%s6527_s1 + $0xa0] sm:$0xff]   ;;  %v6144_v4 = vld [vmem:[#allocation2 + $0xd0] sm:$0xf]  ;;  %v5278_v13 = vld [vmem:[%s6527_s1 + $0xa8] sm:$0xff]  }
 0x1cf   : > { %4523 = vmatprep.subr.bf16.mxu0 %v5246_v60  ;;  %4859 = vmatprep.subr.bf16.mxu1 %v5247_v22  ;;  %v1949_v60 = vld [vmem:[#allocation2 + $0xb8] sm:$0xf]  ;;  %v2247_v63 = vrot.slane %v6126_v14, 1  ;;  %v2119_v59 = vshll.u32 %v6121_v12, 16  ;;  %v2124_v43 = vshll.u32 %v5267_v32, 16  ;;  %v5286_v53 = vld [vmem:[%s6527_s1 + $0x40] sm:$0xff]  }
 0x1d0   : > { %v1975_v40 = vld [vmem:[#allocation2 + $0xcc] sm:$0xe]  ;;  %v6150_v33 = vld [vmem:[#allocation2 + $0xd4] ss:$0 sps:$4 sm:$0x11]   ;;  %v5287_v58 = vld [vmem:[%s6527_s1] sm:$0xff]   ;;  %v6156_v29 = vcombine.low %v1948_v36, %v1949_v60 }
 0x1d1   : > { %v2121_v8 = vrot.slane %v2119_v59, 1  ;;  %v2126_v41 = vrot.slane %v2124_v43, 1  ;;  %v3937_v19 = vcombine.low %v1975_v40, %v6144_v4  ;;  %v6161_v26 = vld [vmem:[#allocation2 + $0xdc] sm:$0xf]  ;;  %v2250_v50 = vrot.slane %v6150_v33, 1  ;;  %v5298_v59 = vld [vmem:[%s6527_s1 + $0x50] sm:$0xff]  }
 0x1d2   : > { %4524 = vmatpush3.bf16.msra.mxu0 %v5248_v47  ;;  %4860 = vmatpush3.bf16.msra.mxu1 %v5247_v22  ;;  %v1973_v22 = vld [vmem:[#allocation2 + $0xb4] sm:$0xe]  ;;  %v6114_v47 = vsel %vm601_vm1, %v2240_v3, %v2241_v42  ;;  %v6167_v52 = vld [vmem:[#allocation2 + $0xe0] ss:$0 sps:$4 sm:$0x11]   ;;  %v2129_v32 = vshrl.u32 %v6156_v29, 16 }
 0x1d3   : > { %4525 = vmatprep.subr.bf16.mxu0 %v5249_v38  ;;  %4861 = vmatprep.subr.bf16.mxu1 %v5250_v10  ;;  %v5270_v38 = vld [vmem:[%s6527_s1 + $0x98] sm:$0xff]   ;;  %v3935_v28 = vcombine.low %v1973_v22, %v1949_v60  ;;  %v2249_v45 = vrot.slane %v3937_v19, 1  ;;  %v2253_v21 = vrot.slane %v6167_v52, 1  ;;  %v2131_v62 = vshll.u32 %v6156_v29, 16  ;;  %v1950_v42 = vld [vmem:[#allocation2 + $0xc0] sm:$0xf] }
 0x1d4   : > { %v1968_v22 = vld [vmem:[#allocation2 + $0x78] sm:$0xe]  ;;  %v5293_v40 = vld [vmem:[%s6527_s1 + $0x180] sm:$0xff]  }
 0x1d5   : > { %v6176_v34 = vsel %vm601_vm1, %v2249_v45, %v2250_v50  ;;  %v5302_v45 = vld [vmem:[%s6527_s1 + $0x58] sm:$0xff]   ;;  %v2160_v50 = vshll.u32 %v6150_v33, 16 }
 0x1d6   : > { %4526 = vmatpush3.bf16.msra.mxu0 %v5251_v35  ;;  %4862 = vmatpush3.bf16.msra.mxu1 %v5250_v10  ;;  %v2109_v10 = vrot.slane %v2107_v56, 1  ;;  %v2114_v35 = vrot.slane %v2112_v0, 1  ;;  %v6187_v56 = vld [vmem:[#allocation2 + $0x7c] sm:$0xf] }
 0x1d7   : > { %4527 = vmatprep.subr.bf16.mxu0 %v5252_v1  ;;  %4863 = vmatprep.subr.bf16.mxu1 %v5253_v25  ;;  %v6119_v1 = vld [vmem:[#allocation2 + $0xbc] ss:$0 sps:$4 sm:$0x11]  }
 0x1d8   : > { %v2110_v9 = vor.u32 %v2109_v10, %v2105_v7  ;;  %v2244_v24 = vrot.slane %v6119_v1, 1  ;;  %v2136_v3 = vshll.u32 %v6119_v1, 16  ;;  %v2133_v7 = vrot.slane %v2131_v62, 1  ;;  %v5288_v0 = vld [vmem:[%s6527_s1 + $0xb8] sm:$0xff]   ;;  %v5301_v62 = vld [vmem:[%s6527_s1 + $0x190] sm:$0xff]  }
 0x1d9   : > { %v5304_v33 = vld [vmem:[%s6527_s1 + $0x18] sm:$0xff]  }
 0x1da   : > { %4528 = vmatpush3.bf16.msra.mxu0 %v5254_v27  ;;  %4864 = vmatpush3.bf16.msra.mxu1 %v5253_v25  ;;  %v6123_v25 = vld [vmem:[#allocation2 + $0xc4] sm:$0xf]  ;;  %v2243_v27 = vrot.slane %v3935_v28, 1  ;;  %v6132_v55 = vsel %vm440_vm0, %v2110_v9, %v2114_v35  ;;  %v2138_v60 = vrot.slane %v2136_v3, 1  ;;  %v2134_v35 = vor.u32 %v2133_v7, %v2129_v32 }
 0x1db   : > { %4881 = vmatprep.subr.bf16.mxu1 %v5261_v61  ;;  %v3936_v46 = vcombine.low %v1974_v44, %v6123_v25  ;;  %4593 = vmatprep.subr.bf16.mxu0 %v5286_v53  ;;  %v3930_v28 = vcombine.low %v1968_v22, %v6187_v56  ;;  %v6199_v1 = vcombine.low %v1950_v42, %v6123_v25  ;;  %v1952_v44 = vld [vmem:[#allocation2 + $0xcc] sm:$0xf]  ;;  %v1954_v53 = vld [vmem:[#allocation2 + $0xd8] sm:$0xf]  ;;  %v2162_v32 = vrot.slane %v2160_v50, 1  ;;  %v5306_v7 = vld [vmem:[%s6527_s1 + $0x60] sm:$0xff]  }
 0x1dc   : > { %v6135_v57 = vsel %vm601_vm1, %v2243_v27, %v2244_v24  ;;  %v5294_v27 = vld [vmem:[%s6527_s1 + $0x48] sm:$0xff]   ;;  %v6206_v24 = vsel %vm440_vm0, %v2134_v35, %v2138_v60  ;;  %v6225_v43 = vcombine.low %v1952_v44, %v6144_v4  ;;  %v5300_v4 = vld [vmem:[%s6527_s1 + $0x10] sm:$0xff]   ;;  %v5305_v22 = vld [vmem:[%s6527_s1 + $0x198] sm:$0xff]  }
 0x1dd   : > { %2541 = vmatmul.mubr.bf16.vlgmr.msra.gmra.mrb[80].mxu0 %v6068_v16  ;;  %4866 = vmatmul.mubr.bf16.vlgmr.msra.gmra.mrb[48].mxu1 %v6087_v51  ;;  %v2246_v39 = vrot.slane %v3936_v46, 1  ;;  %v2228_v36 = vrot.slane %v3930_v28, 1  ;;  %v5295_v46 = vld [vmem:[%s6527_s1 + $0x8] sm:$0xff]   ;;  %v2172_v28 = vshll.u32 %v6167_v52, 16  ;;  %v5308_v44 = vld [vmem:[%s6527_s1 + $0x20] sm:$0xff]   ;;  %v5321_v50 = vld [vmem:[%s6527_s1 + $0x1b8] sm:$0xff]  }
 0x1de   : > { %4882 = vmatpush3.bf16.msra.mxu1 %v5261_v61  ;;  %2548 = vmatprep.mubr.bf16.mxu0 %v6101_v49  ;;  %v2117_v61 = vshrl.u32 %v6121_v12, 16  ;;  %v5307_v52 = vld [vmem:[%s6527_s1 + $0x1e0] sm:$0xff]  }
 0x1df   : > { %4883 = vmatprep.subr.bf16.mxu1 %v5262_v11  ;;  %4869 = vmatprep.mubr.bf16.mxu1 %v6104_v2  ;;  %v6159_v6 = vsel %vm601_vm1, %v2246_v39, %v2247_v63  ;;  %v5292_v63 = vld [vmem:[%s6527_s1 + $0x1c0] sm:$0xff]   ;;  %v2148_v39 = vshll.u32 %v6126_v14, 16 }
 0x1e0   : > { %v2122_v23 = vor.u32 %v2121_v8, %v2117_v61  ;;  %4594 = vmatpush3.bf16.msra.mxu0 %v5287_v58  ;;  %v2143_v61 = vshll.u32 %v6199_v1, 16  ;;  %v5296_v8 = vld [vmem:[%s6527_s1 + $0x1c8] sm:$0xff]   ;;  %v2153_v58 = vshrl.u32 %v6225_v43, 16 }
 0x1e1   : > { %4595 = vmatprep.subr.bf16.mxu0 %v5294_v27  ;;  %v2150_v14 = vrot.slane %v2148_v39, 1  ;;  %v5313_v39 = vld [vmem:[%s6527_s1 + $0x1a8] sm:$0xff]  }
 0x1e2   : > { %4884 = vmatpush3.bf16.msra.mxu1 %v5262_v11  ;;  %v1976_v11 = vld [vmem:[#allocation2 + $0xd8] sm:$0xe]  ;;  %v6173_v30 = vsel %vm440_vm0, %v2122_v23, %v2126_v41  ;;  %v2145_v41 = vrot.slane %v2143_v61, 1 }
 0x1e3   : > { %4885 = vmatprep.subr.bf16.mxu1 %v5269_v18  ;;  %v3938_v17 = vcombine.low %v1976_v11, %v6161_v26  ;;  %v2155_v11 = vshll.u32 %v6225_v43, 16 }
 0x1e4   : > { %4596 = vmatpush3.bf16.msra.mxu0 %v5295_v46 }
 0x1e5   : > { %2549 = vmatmul.mubr.bf16.gmra.mrb[84].mxu0 %v6078_v48  ;;  %4870 = vmatmul.mubr.bf16.gmra.mrb[52].mxu1 %v6114_v47  ;;  %v2252_v54 = vrot.slane %v3938_v17, 1  ;;  %v5297_v17 = vld [vmem:[%s6527_s1 + $0x188] sm:$0xff]  }
 0x1e6   : > { %4886 = vmatpush3.bf16.msra.mxu1 %v5269_v18  ;;  %2556 = vmatprep.mubr.bf16.mxu0 %v6132_v55  ;;  %v5285_v18 = vld [vmem:[%s6527_s1 + $0xb0] sm:$0xff]  }
 0x1e7   : > { %4887 = vmatprep.subr.bf16.mxu1 %v5270_v38  ;;  %4873 = vmatprep.mubr.bf16.mxu1 %v6135_v57  ;;  %v6195_v10 = vsel %vm601_vm1, %v2252_v54, %v2253_v21  ;;  %v1938_v21 = vld [vmem:[#allocation2 + $0x78] sm:$0xf] }
 0x1e8   : > { %4597 = vmatprep.subr.bf16.mxu0 %v5298_v59  ;;  %v6276_v60 = vcombine.low %v1938_v21, %v6187_v56  ;;  %v5310_v56 = vld [vmem:[%s6527_s1 + $0x68] sm:$0xff]   ;;  %v5324_v21 = vld [vmem:[%s6527_s1 + $0x210] sm:$0xff]  }
 0x1e9   : > { %4598 = vmatpush3.bf16.msra.mxu0 %v5300_v4  ;;  %v5317_v4 = vld [vmem:[%s6527_s1 + $0x1b0] sm:$0xff]  }
 0x1ea   : > { %4888 = vmatpush3.bf16.msra.mxu1 %v5270_v38  ;;  %v6192_v38 = vld [vmem:[#allocation2 + $0x80] ss:$0 sps:$4 sm:$0x11]   ;;  %4599 = vmatprep.subr.bf16.mxu0 %v5302_v45  ;;  %v2071_v46 = vshll.u32 %v6276_v60, 16 }
 0x1eb   : > { %4889 = vmatprep.subr.bf16.mxu1 %v5277_v37  ;;  %v2229_v9 = vrot.slane %v6192_v38, 1  ;;  %v2076_v61 = vshll.u32 %v6192_v38, 16  ;;  %v5315_v38 = vld [vmem:[%s6527_s1 + $0x1f0] sm:$0xff]  }
 0x1ed   : > { %2557 = vmatmul.mubr.bf16.gmra.mrb[88].mxu0 %v6096_v20  ;;  %4874 = vmatmul.mubr.bf16.gmra.mrb[56].mxu1 %v6159_v6  ;;  %v2230_v25 = vsel %vm601_vm1, %v2228_v36, %v2229_v9  ;;  %v5309_v9 = vld [vmem:[%s6527_s1 + $0x1a0] sm:$0xff]   ;;  %v2174_v36 = vrot.slane %v2172_v28, 1 }
 0x1ee   : > { %4890 = vmatpush3.bf16.msra.mxu1 %v5277_v37  ;;  %2564 = vmatprep.mubr.bf16.mxu0 %v6173_v30  ;;  %v2141_v37 = vshrl.u32 %v6199_v1, 16 }
 0x1ef   : > { %4891 = vmatprep.subr.bf16.mxu1 %v5278_v13  ;;  %4877 = vmatprep.mubr.bf16.mxu1 %v6176_v34 }
 0x1f0   : > { %v2146_v19 = vor.u32 %v2145_v41, %v2141_v37  ;;  %4600 = vmatpush3.bf16.msra.mxu0 %v5304_v33  ;;  %v2069_v37 = vshrl.u32 %v6276_v60, 16  ;;  %v5318_v41 = vld [vmem:[%s6527_s1 + $0x78] sm:$0xff]  }
 0x1f1   : > { %4601 = vmatprep.subr.bf16.mxu0 %v5306_v7 }
 0x1f2   : > { %4892 = vmatpush3.bf16.msra.mxu1 %v5278_v13  ;;  %v6239_v13 = vcombine.low %v1954_v53, %v6161_v26  ;;  %v6244_v23 = vsel %vm440_vm0, %v2146_v19, %v2150_v14  ;;  %v2157_v26 = vrot.slane %v2155_v11, 1  ;;  %v5314_v53 = vld [vmem:[%s6527_s1 + $0x70] sm:$0xff]   ;;  %v2078_v19 = vrot.slane %v2076_v61, 1  ;;  %v5319_v11 = vld [vmem:[%s6527_s1 + $0x1f8] sm:$0xff]  }
 0x1f3   : > { %4893 = vmatprep.subr.bf16.mxu1 %v5285_v18 }
 0x1f4   : > { %v2158_v54 = vor.u32 %v2157_v26, %v2153_v58  ;;  %v2167_v42 = vshll.u32 %v6239_v13, 16  ;;  %4602 = vmatpush3.bf16.msra.mxu0 %v5308_v44  ;;  %v5320_v58 = vld [vmem:[%s6527_s1 + $0x38] sm:$0xff]   ;;  %v5323_v26 = vld [vmem:[%s6527_s1 + $0x208] sm:$0xff]  }
 0x1f5   : > { %2565 = vmatmul.mubr.bf16.gmra.mrb[92].mxu0 %v6121_v12  ;;  %4878 = vmatmul.mubr.bf16.gmra.mrb[60].mxu1 %v6195_v10 }
 0x1f6   : > { %4894 = vmatpush3.bf16.msra.mxu1 %v5285_v18  ;;  %2572 = vmatprep.mubr.bf16.mxu0 %v6206_v24  ;;  %v5303_v18 = vld [vmem:[%s6527_s1 + $0x1d8] sm:$0xff]   ;;  %v6269_v3 = vsel %vm440_vm0, %v2158_v54, %v2162_v32  ;;  %v2169_v35 = vrot.slane %v2167_v42, 1  ;;  %v5327_v32 = vld [vmem:[%s6527_s1 + $0x228] sm:$0xff]  }
 0x1f7   : > { %4895 = vmatprep.subr.bf16.mxu1 %v5288_v0  ;;  %4897 = vmatprep.mubr.bf16.mxu1 %v2230_v25  ;;  %v5311_v25 = vld [vmem:[%s6527_s1 + $0x1e8] sm:$0xff]  }
 0x1f8   : > { %4603 = vmatprep.subr.bf16.mxu0 %v5310_v56 }
 0x1fa   : > { %4896 = vmatpush3.bf16.msra.mxu1 %v5288_v0  ;;  %v2165_v0 = vshrl.u32 %v6239_v13, 16 }
 0x1fb   : > { %4673 = vmatprep.subr.bf16.mxu1 %v5292_v63  ;;  %v5312_v63 = vld [vmem:[%s6527_s1 + $0x28] sm:$0xff]  }
 0x1fc   : > { %v2170_v27 = vor.u32 %v2169_v35, %v2165_v0  ;;  %4604 = vmatpush3.bf16.msra.mxu0 %v5312_v63 }
 0x1fd   : > { %2573 = vmatmul.mubr.bf16.gmra.mrb[96].mxu0 %v6156_v29  ;;  %4898 = vmatmul.mubr.bf16.vlgmr.msra.gmra.mrb[48].mxu1 %v6081_v5  ;;  %v5299_v5 = vld [vmem:[%s6527_s1 + $0x1d0] sm:$0xff]  }
 0x1fe   : > { %4674 = vmatpush3.bf16.msra.mxu1 %v5293_v40  ;;  %2580 = vmatprep.mubr.bf16.mxu0 %v6244_v23  ;;  %v6311_v59 = vsel %vm440_vm0, %v2170_v27, %v2174_v36  ;;  %v2073_v40 = vrot.slane %v2071_v46, 1 }
 0x1ff   : > { %4675 = vmatprep.subr.bf16.mxu1 %v5296_v8  ;;  %4901 = vmatprep.mubr.bf16.mxu1 %v6087_v51  ;;  %v5316_v8 = vld [vmem:[%s6527_s1 + $0x30] sm:$0xff]  }
 0x200   : > { %4605 = vmatprep.subr.bf16.mxu0 %v5314_v53  ;;  %v2074_v14 = vor.u32 %v2073_v40, %v2069_v37 }
 0x201   : > { %4606 = vmatpush3.bf16.msra.mxu0 %v5316_v8 }
 0x202   : > { %4676 = vmatpush3.bf16.msra.mxu1 %v5297_v17  ;;  %4607 = vmatprep.subr.bf16.mxu0 %v5318_v41  ;;  %v2079_v45 = vsel %vm440_vm0, %v2074_v14, %v2078_v19  ;;  %v5322_v17 = vld [vmem:[%s6527_s1 + $0x200] sm:$0xff]  }
 0x203   : > { %4677 = vmatprep.subr.bf16.mxu1 %v5299_v5  ;;  %v5325_v5 = vld [vmem:[%s6527_s1 + $0x218] sm:$0xff]  }
 0x205   : > { %2581 = vmatmul.mubr.bf16.gmra.mrb[100].mxu0 %v6199_v1  ;;  %4902 = vmatmul.mubr.bf16.gmra.mrb[52].mxu1 %v6104_v2 }
 0x206   : > { %4678 = vmatpush3.bf16.msra.mxu1 %v5301_v62  ;;  %2588 = vmatprep.mubr.bf16.mxu0 %v6269_v3 }
 0x207   : > { %4679 = vmatprep.subr.bf16.mxu1 %v5303_v18  ;;  %4905 = vmatprep.mubr.bf16.mxu1 %v6114_v47 }
 0x208   : > { %4608 = vmatpush3.bf16.msra.mxu0 %v5320_v58 }
 0x20a   : > { %4680 = vmatpush3.bf16.msra.mxu1 %v5305_v22 }
 0x20b   : > { %4681 = vmatprep.subr.bf16.mxu1 %v5307_v52 }
 0x20d   : > { %2589 = vmatmul.mubr.bf16.gmra.mrb[104].mxu0 %v6225_v43  ;;  %4906 = vmatmul.mubr.bf16.gmra.mrb[56].mxu1 %v6135_v57 }
 0x20e   : > { %4682 = vmatpush3.bf16.msra.mxu1 %v5309_v9  ;;  %2596 = vmatprep.mubr.bf16.mxu0 %v6311_v59 }
 0x20f   : > { %4683 = vmatprep.subr.bf16.mxu1 %v5311_v25  ;;  %4909 = vmatprep.mubr.bf16.mxu1 %v6159_v6 }
 0x212   : > { %4684 = vmatpush3.bf16.msra.mxu1 %v5313_v39 }
 0x213   : > { %4685 = vmatprep.subr.bf16.mxu1 %v5315_v38 }
 0x215   : > { %2597 = vmatmul.mubr.bf16.gmra.mrb[108].mxu0 %v6239_v13  ;;  %4910 = vmatmul.mubr.bf16.gmra.mrb[60].mxu1 %v6176_v34 }
 0x216   : > { %4686 = vmatpush3.bf16.msra.mxu1 %v5317_v4  ;;  %2878 = vmatprep.mubr.bf16.mxu0 %v2079_v45 }
 0x217   : > { %4687 = vmatprep.subr.bf16.mxu1 %v5319_v11  ;;  %3264 = vmatprep.mubr.bf16.mxu1 %v6101_v49 }
 0x21a   : > { %4688 = vmatpush3.bf16.msra.mxu1 %v5321_v50 }
 0x21b   : > { %4913 = vmatprep.subr.bf16.mxu1 %v5322_v17 }
 0x21d   : > { %2879 = vmatmul.mubr.bf16.vlgmr.msra.gmra.mrb[112].mxu0 %v6276_v60  ;;  %3265 = vmatmul.mubr.bf16.vlgmr.msra.gmra.mrb[64].mxu1 %v6078_v48 }
 0x21e   : > { %4914 = vmatpush3.bf16.msra.mxu1 %v5322_v17  ;;  %2886 = vmatprep.mubr.bf16.mxu0 %v6090_v31  ;;  %v5326_v31 = vld [vmem:[%s6527_s1 + $0x220] sm:$0xff]  }
 0x21f   : > { %3272 = vmatprep.mubr.bf16.mxu1 %v6132_v55  ;;  %4915 = vmatprep.subr.bf16.mxu1 %v5323_v26 }
 0x222   : > { %4916 = vmatpush3.bf16.msra.mxu1 %v5323_v26 }
 0x223   : > { %4917 = vmatprep.subr.bf16.mxu1 %v5324_v21 }
 0x225   : > { %2887 = vmatmul.mubr.bf16.gmra.mrb[116].mxu0 %v6068_v16  ;;  %3273 = vmatmul.mubr.bf16.gmra.mrb[68].mxu1 %v6096_v20  ;;  %v5328_v16 = vld [vmem:[%s6527_s1 + $0x230] sm:$0xff]  }
 0x226   : > { %2894 = vmatprep.mubr.bf16.mxu0 %v6101_v49  ;;  %3280 = vmatprep.mubr.bf16.mxu1 %v6173_v30  ;;  %v5331_v49 = vld [vmem:[%s6527_s1 + $0x238] sm:$0xff]  }
 0x227   : > { %4918 = vmatpush3.bf16.msra.mxu1 %v5324_v21 }
 0x228   : > { %4919 = vmatprep.subr.bf16.mxu1 %v5325_v5 }
 0x22b   : > { %4920 = vmatpush3.bf16.msra.mxu1 %v5325_v5 }
 0x22c   : > { %4921 = vmatprep.subr.bf16.mxu1 %v5326_v31 }
 0x22d   : > { %2895 = vmatmul.mubr.bf16.gmra.mrb[120].mxu0 %v6078_v48  ;;  %3281 = vmatmul.mubr.bf16.gmra.mrb[72].mxu1 %v6121_v12  ;;  %v1956_v48 = vld [vmem:[#allocation2 + $0xe4] sm:$0xf] }
 0x22e   : > { %2902 = vmatprep.mubr.bf16.mxu0 %v6132_v55  ;;  %3288 = vmatprep.mubr.bf16.mxu1 %v6206_v24  ;;  %v1957_v55 = vld [vmem:[#allocation2 + $0xe8] sm:$0xf] }
 0x22f   : > { %4922 = vmatpush3.bf16.msra.mxu1 %v5326_v31  ;;  %v3919_v33 = vcombine.low %v1956_v48, %v1957_v55 }
 0x230   : > { %4923 = vmatprep.subr.bf16.mxu1 %v5327_v32 }
 0x231   : > { %v2179_v54 = vshll.u32 %v3919_v33, 16  ;;  %v2177_v62 = vshrl.u32 %v3919_v33, 16 }
 0x233   : > { %4924 = vmatpush3.bf16.msra.mxu1 %v5327_v32 }
 0x234   : > { %4925 = vmatprep.subr.bf16.mxu1 %v5328_v16 }
 0x235   : > { %2903 = vmatmul.mubr.bf16.gmra.mrb[124].mxu0 %v6096_v20  ;;  %3289 = vmatmul.mubr.bf16.gmra.mrb[76].mxu1 %v6156_v29  ;;  %v5330_v20 = vld [vmem:[#allocation2 + $0xec] ss:$0 sps:$4 sm:$0x11]  }
 0x236   : > { %2910 = vmatprep.mubr.bf16.mxu0 %v6173_v30  ;;  %3296 = vmatprep.mubr.bf16.mxu1 %v6244_v23  ;;  %v2181_v30 = vrot.slane %v2179_v54, 1  ;;  %v2184_v42 = vshll.u32 %v5330_v20, 16 }
 0x237   : > { %4926 = vmatpush3.bf16.msra.mxu1 %v5328_v16 }
 0x238   : > { %4927 = vmatprep.subr.bf16.mxu1 %v5331_v49  ;;  %v2186_v18 = vrot.slane %v2184_v42, 1 }
 0x23b   : > { %4928 = vmatpush3.bf16.msra.mxu1 %v5331_v49 }
 0x23d   : > { %2911 = vmatmul.mubr.bf16.gmra.mrb[128].mxu0 %v6121_v12  ;;  %3297 = vmatmul.mubr.bf16.gmra.mrb[80].mxu1 %v6199_v1  ;;  %v2182_v12 = vor.u32 %v2181_v30, %v2177_v62 }
 0x23e   : > { %2918 = vmatprep.mubr.bf16.mxu0 %v6206_v24  ;;  %3304 = vmatprep.mubr.bf16.mxu1 %v6269_v3 }
 0x23f   : > { %v2187_v7 = vsel %vm440_vm0, %v2182_v12, %v2186_v18 }
 0x245   : > { %2919 = vmatmul.mubr.bf16.gmra.mrb[132].mxu0 %v6156_v29  ;;  %3305 = vmatmul.mubr.bf16.gmra.mrb[84].mxu1 %v6225_v43  ;;  %v1977_v29 = vld [vmem:[#allocation2 + $0xe4] sm:$0xe] }
 0x246   : > { %2926 = vmatprep.mubr.bf16.mxu0 %v6244_v23  ;;  %3312 = vmatprep.mubr.bf16.mxu1 %v6311_v59 }
 0x24d   : > { %2927 = vmatmul.mubr.bf16.gmra.mrb[136].mxu0 %v6199_v1  ;;  %3313 = vmatmul.mubr.bf16.gmra.mrb[88].mxu1 %v6239_v13  ;;  %v3939_v1 = vcombine.low %v1977_v29, %v1957_v55  ;;  %v2256_v13 = vrot.slane %v5330_v20, 1 }
 0x24e   : > { %2934 = vmatprep.mubr.bf16.mxu0 %v6269_v3  ;;  %3320 = vmatprep.mubr.bf16.mxu1 %v2187_v7 }
 0x24f   : > { %v2255_v24 = vrot.slane %v3939_v1, 1 }
 0x255   : > { %2935 = vmatmul.mubr.bf16.gmra.mrb[140].mxu0 %v6225_v43  ;;  %3321 = vmatmul.mubr.bf16.gmra.mrb[92].mxu1 %v3919_v33  ;;  %v2257_v43 = vsel %vm601_vm1, %v2255_v24, %v2256_v13 }
 0x256   : > { %4929 = vmatprep.mubr.bf16.mxu1 %v6087_v51 }
 0x25d   : > { %4930 = vmatmul.mubr.bf16.vlgmr.msra.gmra.mrb[48].mxu1 %v6104_v2 }
 0x25e   : > { %4933 = vmatprep.mubr.bf16.mxu1 %v6114_v47 }
 0x265   : > { %4934 = vmatmul.mubr.bf16.gmra.mrb[52].mxu1 %v6135_v57 }
 0x266   : > { %4937 = vmatprep.mubr.bf16.mxu1 %v6159_v6 }
 0x26d   : > { %4938 = vmatmul.mubr.bf16.gmra.mrb[56].mxu1 %v6176_v34 }
 0x26e   : > { %4941 = vmatprep.mubr.bf16.mxu1 %v6195_v10 }
 0x275   : > { %4942 = vmatmul.mubr.bf16.gmra.mrb[60].mxu1 %v2257_v43 }
 0x2b0   : > { %v4529_v51 = vpop.f32.mrb[80].mxu0 }
 0x2b1   : > { %v4530_v23 = vpop.f32.mrb[81].mxu0 }
 0x2b2   : > { %v4531_v2 = vadd.f32 %v4530_v23, %v4529_v51  ;;  %v4532_v3 = vpop.f32.mrb[82].mxu0 }
 0x2b3   : > { %v4533_v47 = vpop.f32.mrb[83].mxu0 }
 0x2b4   : > { %v4534_v0 = vadd.f32 %v4533_v47, %v4532_v3 }
 0x2b8   : > { %v4535_v57 = vpop.f32.mrb[84].mxu0 }
 0x2b9   : > { %v4536_v60 = vpop.f32.mrb[85].mxu0 }
 0x2ba   : > { %v6406_v6 = vadd.f32 %v4536_v60, %v4535_v57  ;;  %v4538_v22 = vpop.f32.mrb[86].mxu0 }
 0x2bb   : > { %v4539_v35 = vpop.f32.mrb[87].mxu0 }
 0x2bc   : > { %v6408_v34 = vadd.f32 %v4539_v35, %v4538_v22 }
 0x2c0   : > { %v4541_v10 = vpop.f32.mrb[88].mxu0 }
 0x2c1   : > { %v4542_v28 = vpop.f32.mrb[89].mxu0 }
 0x2c2   : > { %v6410_v44 = vadd.f32 %v4542_v28, %v4541_v10  ;;  %v4544_v56 = vpop.f32.mrb[90].mxu0 }
 0x2c3   : > { %v4545_v52 = vpop.f32.mrb[91].mxu0 }
 0x2c4   : > { %v6412_v9 = vadd.f32 %v4545_v52, %v4544_v56 }
 0x2c8   : > { %v4547_v27 = vpop.f32.mrb[92].mxu0 }
 0x2c9   : > { %v4548_v36 = vpop.f32.mrb[93].mxu0 }
 0x2ca   : > { %v6414_v46 = vadd.f32 %v4548_v36, %v4547_v27  ;;  %v4550_v25 = vpop.f32.mrb[94].mxu0 }
 0x2cb   : > { %v4551_v63 = vpop.f32.mrb[95].mxu0 }
 0x2cc   : > { %v6416_v37 = vadd.f32 %v4551_v63, %v4550_v25 }
 0x2d0   : > { %v4553_v61 = vpop.f32.mrb[96].mxu0 }
 0x2d1   : > { %v4554_v39 = vpop.f32.mrb[97].mxu0 }
 0x2d2   : > { %v6418_v59 = vadd.f32 %v4554_v39, %v4553_v61  ;;  %v4556_v53 = vpop.f32.mrb[98].mxu0 }
 0x2d3   : > { %v4557_v40 = vpop.f32.mrb[99].mxu0 }
 0x2d4   : > { %v6420_v38 = vadd.f32 %v4557_v40, %v4556_v53 }
 0x2d8   : > { %v4559_v8 = vpop.f32.mrb[100].mxu0 }
 0x2d9   : > { %v4560_v41 = vpop.f32.mrb[101].mxu0 }
 0x2da   : > { %v6422_v14 = vadd.f32 %v4560_v41, %v4559_v8  ;;  %v4562_v19 = vpop.f32.mrb[102].mxu0 }
 0x2db   : > { %v4563_v4 = vpop.f32.mrb[103].mxu0 }
 0x2dc   : > { %v6424_v58 = vadd.f32 %v4563_v4, %v4562_v19 }
 0x2e0   : > { %v4565_v11 = vpop.f32.mrb[104].mxu0 }
 0x2e1   : > { %v4566_v45 = vpop.f32.mrb[105].mxu0 }
 0x2e2   : > { %v6426_v50 = vadd.f32 %v4566_v45, %v4565_v11  ;;  %v4568_v17 = vpop.f32.mrb[106].mxu0 }
 0x2e3   : > { %v4569_v26 = vpop.f32.mrb[107].mxu0 }
 0x2e4   : > { %v6428_v21 = vadd.f32 %v4569_v26, %v4568_v17 }
 0x2e8   : > { %v4571_v5 = vpop.f32.mrb[108].mxu0 }
 0x2e9   : > { %v4572_v31 = vpop.f32.mrb[109].mxu0 }
 0x2ea   : > { %v6430_v32 = vadd.f32 %v4572_v31, %v4571_v5  ;;  %v4574_v16 = vpop.f32.mrb[110].mxu0 }
 0x2eb   : > { %v4575_v49 = vpop.f32.mrb[111].mxu0 }
 0x2ec   : > { %v6432_v48 = vadd.f32 %v4575_v49, %v4574_v16 }
 0x2f0   : > { %v4609_v55 = vpop.f32.mrb[112].mxu0  ;;  %v4689_v33 = vpop.f32.mrb[64].mxu1 }
 0x2f1   : > { %v4610_v20 = vpop.f32.mrb[113].mxu0  ;;  %v4690_v54 = vpop.f32.mrb[65].mxu1 }
 0x2f2   : > { %v4611_v62 = vadd.f32 %v4610_v20, %v4609_v55  ;;  %v4691_v30 = vadd.f32 %v4690_v54, %v4689_v33  ;;  %v4612_v42 = vpop.f32.mrb[114].mxu0  ;;  %v4692_v12 = vpop.f32.mrb[66].mxu1 }
 0x2f3   : > { %v4613_v18 = vpop.f32.mrb[115].mxu0  ;;  %v4693_v7 = vpop.f32.mrb[67].mxu1 }
 0x2f4   : > { %v5012_v29 = vadd.f32 %v4611_v62, %v4531_v2  ;;  %v4614_v1 = vadd.f32 %v4613_v18, %v4612_v42  ;;  %v4694_v24 = vadd.f32 %v4693_v7, %v4692_v12 }
 0x2f6   : > { %v5018_v13 = vadd.f32 %v4614_v1, %v4534_v0  ;;  %v6434_v43 = vadd.f32 %v5012_v29, %v4691_v30 }
 0x2f8   : > { %v4615_v51 = vpop.f32.mrb[116].mxu0  ;;  %v4695_v23 = vpop.f32.mrb[68].mxu1  ;;  %v6436_v3 = vadd.f32 %v5018_v13, %v4694_v24 }
 0x2f9   : > { %v4616_v47 = vpop.f32.mrb[117].mxu0  ;;  %v4696_v57 = vpop.f32.mrb[69].mxu1 }
 0x2fa   : > { %v4617_v60 = vadd.f32 %v4616_v47, %v4615_v51  ;;  %v4697_v22 = vadd.f32 %v4696_v57, %v4695_v23  ;;  %v4618_v35 = vpop.f32.mrb[118].mxu0  ;;  %v4698_v10 = vpop.f32.mrb[70].mxu1 }
 0x2fb   : > { %v4619_v28 = vpop.f32.mrb[119].mxu0  ;;  %v4699_v56 = vpop.f32.mrb[71].mxu1 }
 0x2fc   : > { %v5009_v52 = vadd.f32 %v4617_v60, %v6406_v6  ;;  %v4620_v2 = vadd.f32 %v4619_v28, %v4618_v35  ;;  %v4700_v27 = vadd.f32 %v4699_v56, %v4698_v10 }
 0x2fe   : > { %v5015_v0 = vadd.f32 %v4620_v2, %v6408_v34  ;;  %v6440_v36 = vadd.f32 %v5009_v52, %v4697_v22 }
 0x300   : > { %v4621_v25 = vpop.f32.mrb[120].mxu0  ;;  %v4701_v63 = vpop.f32.mrb[72].mxu1  ;;  %v6442_v61 = vadd.f32 %v5015_v0, %v4700_v27 }
 0x301   : > { %v4622_v39 = vpop.f32.mrb[121].mxu0  ;;  %v4702_v53 = vpop.f32.mrb[73].mxu1 }
 0x302   : > { %v4623_v40 = vadd.f32 %v4622_v39, %v4621_v25  ;;  %v4703_v8 = vadd.f32 %v4702_v53, %v4701_v63  ;;  %v4624_v41 = vpop.f32.mrb[122].mxu0  ;;  %v4704_v19 = vpop.f32.mrb[74].mxu1 }
 0x303   : > { %v4625_v4 = vpop.f32.mrb[123].mxu0  ;;  %v4705_v11 = vpop.f32.mrb[75].mxu1 }
 0x304   : > { %v5024_v6 = vadd.f32 %v4623_v40, %v6410_v44  ;;  %v4626_v45 = vadd.f32 %v4625_v4, %v4624_v41  ;;  %v4706_v17 = vadd.f32 %v4705_v11, %v4704_v19 }
 0x306   : > { %v5030_v34 = vadd.f32 %v4626_v45, %v6412_v9  ;;  %v6446_v26 = vadd.f32 %v5024_v6, %v4703_v8 }
 0x308   : > { %v4627_v5 = vpop.f32.mrb[124].mxu0  ;;  %v4707_v31 = vpop.f32.mrb[76].mxu1  ;;  %v6448_v16 = vadd.f32 %v5030_v34, %v4706_v17 }
 0x309   : > { %v4628_v49 = vpop.f32.mrb[125].mxu0  ;;  %v4708_v55 = vpop.f32.mrb[77].mxu1 }
 0x30a   : > { %v4629_v33 = vadd.f32 %v4628_v49, %v4627_v5  ;;  %v4709_v20 = vadd.f32 %v4708_v55, %v4707_v31  ;;  %v4630_v54 = vpop.f32.mrb[126].mxu0  ;;  %v4710_v62 = vpop.f32.mrb[78].mxu1 }
 0x30b   : > { %v4631_v30 = vpop.f32.mrb[127].mxu0  ;;  %v4711_v42 = vpop.f32.mrb[79].mxu1 }
 0x30c   : > { %v5021_v44 = vadd.f32 %v4629_v33, %v6414_v46  ;;  %v4632_v12 = vadd.f32 %v4631_v30, %v4630_v54  ;;  %v4712_v18 = vadd.f32 %v4711_v42, %v4710_v62 }
 0x30e   : > { %v5027_v9 = vadd.f32 %v4632_v12, %v6416_v37  ;;  %v6452_v7 = vadd.f32 %v5021_v44, %v4709_v20 }
 0x310   : > { %v4633_v29 = vpop.f32.mrb[128].mxu0  ;;  %v4713_v1 = vpop.f32.mrb[80].mxu1  ;;  %v6454_v24 = vadd.f32 %v5027_v9, %v4712_v18 }
 0x311   : > { %v4634_v13 = vpop.f32.mrb[129].mxu0  ;;  %v4714_v51 = vpop.f32.mrb[81].mxu1 }
 0x312   : > { %v4635_v23 = vadd.f32 %v4634_v13, %v4633_v29  ;;  %v4715_v47 = vadd.f32 %v4714_v51, %v4713_v1  ;;  %v4636_v57 = vpop.f32.mrb[130].mxu0  ;;  %v4716_v60 = vpop.f32.mrb[82].mxu1 }
 0x313   : > { %v4637_v22 = vpop.f32.mrb[131].mxu0  ;;  %v4717_v35 = vpop.f32.mrb[83].mxu1 }
 0x314   : > { %v5036_v46 = vadd.f32 %v4635_v23, %v6418_v59  ;;  %v4638_v10 = vadd.f32 %v4637_v22, %v4636_v57  ;;  %v4718_v28 = vadd.f32 %v4717_v35, %v4716_v60 }
 0x316   : > { %v5042_v37 = vadd.f32 %v4638_v10, %v6420_v38  ;;  %v6458_v56 = vadd.f32 %v5036_v46, %v4715_v47 }
 0x318   : > { %v4639_v52 = vpop.f32.mrb[132].mxu0  ;;  %v4719_v2 = vpop.f32.mrb[84].mxu1  ;;  %v6460_v27 = vadd.f32 %v5042_v37, %v4718_v28 }
 0x319   : > { %v4640_v0 = vpop.f32.mrb[133].mxu0  ;;  %v4720_v25 = vpop.f32.mrb[85].mxu1 }
 0x31a   : > { %v4641_v63 = vadd.f32 %v4640_v0, %v4639_v52  ;;  %v4721_v39 = vadd.f32 %v4720_v25, %v4719_v2  ;;  %v4642_v53 = vpop.f32.mrb[134].mxu0  ;;  %v4722_v40 = vpop.f32.mrb[86].mxu1 }
 0x31b   : > { %v4643_v8 = vpop.f32.mrb[135].mxu0  ;;  %v4723_v41 = vpop.f32.mrb[87].mxu1 }
 0x31c   : > { %v5033_v59 = vadd.f32 %v4641_v63, %v6422_v14  ;;  %v4644_v19 = vadd.f32 %v4643_v8, %v4642_v53  ;;  %v4724_v4 = vadd.f32 %v4723_v41, %v4722_v40 }
 0x31e   : > { %v5039_v38 = vadd.f32 %v4644_v19, %v6424_v58  ;;  %v6464_v11 = vadd.f32 %v5033_v59, %v4721_v39 }
 0x320   : > { %v4645_v6 = vpop.f32.mrb[136].mxu0  ;;  %v4725_v45 = vpop.f32.mrb[88].mxu1  ;;  %v6466_v17 = vadd.f32 %v5039_v38, %v4724_v4 }
 0x321   : > { %v4646_v34 = vpop.f32.mrb[137].mxu0  ;;  %v4726_v5 = vpop.f32.mrb[89].mxu1 }
 0x322   : > { %v4647_v31 = vadd.f32 %v4646_v34, %v4645_v6  ;;  %v4727_v49 = vadd.f32 %v4726_v5, %v4725_v45  ;;  %v4648_v55 = vpop.f32.mrb[138].mxu0  ;;  %v4728_v33 = vpop.f32.mrb[90].mxu1 }
 0x323   : > { %v4649_v20 = vpop.f32.mrb[139].mxu0  ;;  %v4729_v54 = vpop.f32.mrb[91].mxu1 }
 0x324   : > { %v5048_v14 = vadd.f32 %v4647_v31, %v6426_v50  ;;  %v4650_v62 = vadd.f32 %v4649_v20, %v4648_v55  ;;  %v4730_v30 = vadd.f32 %v4729_v54, %v4728_v33 }
 0x326   : > { %v5054_v58 = vadd.f32 %v4650_v62, %v6428_v21  ;;  %v6470_v42 = vadd.f32 %v5048_v14, %v4727_v49 }
 0x328   : > { %v4651_v44 = vpop.f32.mrb[140].mxu0  ;;  %v4731_v12 = vpop.f32.mrb[92].mxu1  ;;  %v6472_v18 = vadd.f32 %v5054_v58, %v4730_v30 }
 0x329   : > { %v4652_v9 = vpop.f32.mrb[141].mxu0  ;;  %v4732_v29 = vpop.f32.mrb[93].mxu1 }
 0x32a   : > { %v4653_v1 = vadd.f32 %v4652_v9, %v4651_v44  ;;  %v4733_v13 = vadd.f32 %v4732_v29, %v4731_v12  ;;  %v4654_v51 = vpop.f32.mrb[142].mxu0  ;;  %v4734_v23 = vpop.f32.mrb[94].mxu1 }
 0x32b   : > { %v4655_v47 = vpop.f32.mrb[143].mxu0  ;;  %v4735_v57 = vpop.f32.mrb[95].mxu1 }
 0x32c   : > { %v5045_v50 = vadd.f32 %v4653_v1, %v6430_v32  ;;  %v4656_v60 = vadd.f32 %v4655_v47, %v4654_v51  ;;  %v4736_v22 = vadd.f32 %v4735_v57, %v4734_v23 }
 0x32e   : > { %v5051_v21 = vadd.f32 %v4656_v60, %v6432_v48  ;;  %v5046_v35 = vadd.f32 %v5045_v50, %v4733_v13 }
 0x330   : > { %v4931_v46 = vpop.f32.mrb[48].mxu1  ;;  %v6476_v10 = vadd.f32 %v5051_v21, %v4736_v22 }
 0x331   : > { %v5011_v28 = vadd.f32 %v6440_v36, %v4931_v46  ;;  %v3363_v37 = vpop.f32.mrb[49].mxu1 }
 0x332   : > { %v5014_v52 = vadd.f32 %v6434_v43, %v3363_v37  ;;  %v4932_v2 = vpop.f32.mrb[50].mxu1 }
 0x333   : > { %v3444_v0 = vadd.f32 %v5011_v28, %v5427_v15  ;;  %v5017_v25 = vadd.f32 %v6442_v61, %v4932_v2  ;;  %v3366_v63 = vpop.f32.mrb[51].mxu1 }
 0x334   : > { %v3442_v32 = vadd.f32 %v5014_v52, %v5427_v15  ;;  %v5020_v48 = vadd.f32 %v6436_v3, %v3366_v63 }
 0x335   : > { %v3445_v39 = vadd.f32 %v5017_v25, %v5427_v15  ;;  %v3460_v36 = vmax.f32 %v3444_v0, 0.0 }
 0x336   : > { %v3443_v53 = vadd.f32 %v5020_v48, %v5427_v15  ;;  %v3458_v8 = vmax.f32 %v3442_v32, 0.0 }
 0x337   : > { %v3461_v40 = vmax.f32 %v3445_v39, 0.0 }
 0x338   : > { %v3459_v43 = vmax.f32 %v3443_v53, 0.0  ;;  %v4935_v41 = vpop.f32.mrb[52].mxu1 }
 0x339   : > { %v4226_v59 = vpack.c.bf16 %v3461_v40, %v3460_v36  ;;  %v5023_v19 = vadd.f32 %v6452_v7, %v4935_v41  ;;  %v3379_v61 = vpop.f32.mrb[53].mxu1 }
 0x33a   : > { %v4221_v4 = vpack.c.bf16 %v3459_v43, %v3458_v8  ;;  %v5026_v38 = vadd.f32 %v6446_v26, %v3379_v61  ;;  %v4936_v6 = vpop.f32.mrb[54].mxu1 }
 0x33b   : > { %4266 = vst [vmem:[%s5410_s23 + $0x48] sm:$0xff] %v4226_v59   ;;  %v3448_v3 = vadd.f32 %v5023_v19, %v5427_v15  ;;  %v5029_v45 = vadd.f32 %v6454_v24, %v4936_v6  ;;  %v3382_v34 = vpop.f32.mrb[55].mxu1 }
 0x33c   : > { %4265 = vst [vmem:[%s5410_s23 + $0x40] sm:$0xff] %v4221_v4   ;;  %v3446_v5 = vadd.f32 %v5026_v38, %v5427_v15  ;;  %v5032_v31 = vadd.f32 %v6448_v16, %v3382_v34 }
 0x33d   : > { %v3449_v49 = vadd.f32 %v5029_v45, %v5427_v15  ;;  %v3464_v55 = vmax.f32 %v3448_v3, 0.0 }
 0x33e   : > { %v3447_v7 = vadd.f32 %v5032_v31, %v5427_v15  ;;  %v3462_v33 = vmax.f32 %v3446_v5, 0.0 }
 0x33f   : > { %v3465_v26 = vmax.f32 %v3449_v49, 0.0 }
 0x340   : > { %v3463_v20 = vmax.f32 %v3447_v7, 0.0  ;;  %v4939_v54 = vpop.f32.mrb[56].mxu1 }
 0x341   : > { %v4236_v14 = vpack.c.bf16 %v3465_v26, %v3464_v55  ;;  %v5035_v24 = vadd.f32 %v6464_v11, %v4939_v54  ;;  %v3395_v62 = vpop.f32.mrb[57].mxu1 }
 0x342   : > { %v4231_v30 = vpack.c.bf16 %v3463_v20, %v3462_v33  ;;  %v5038_v58 = vadd.f32 %v6458_v56, %v3395_v62  ;;  %v4940_v44 = vpop.f32.mrb[58].mxu1 }
 0x343   : > { %4268 = vst [vmem:[%s5410_s23 + $0x58] sm:$0xff] %v4236_v14   ;;  %v3452_v16 = vadd.f32 %v5035_v24, %v5427_v15  ;;  %v5041_v12 = vadd.f32 %v6466_v17, %v4940_v44  ;;  %v3398_v9 = vpop.f32.mrb[59].mxu1 }
 0x344   : > { %4267 = vst [vmem:[%s5410_s23 + $0x50] sm:$0xff] %v4231_v30   ;;  %v3450_v29 = vadd.f32 %v5038_v58, %v5427_v15  ;;  %v5044_v1 = vadd.f32 %v6460_v27, %v3398_v9 }
 0x345   : > { %v3453_v13 = vadd.f32 %v5041_v12, %v5427_v15  ;;  %v3468_v51 = vmax.f32 %v3452_v16, 0.0 }
 0x346   : > { %v3451_v11 = vadd.f32 %v5044_v1, %v5427_v15  ;;  %v3466_v23 = vmax.f32 %v3450_v29, 0.0 }
 0x347   : > { %v3469_v56 = vmax.f32 %v3453_v13, 0.0 }
 0x348   : > { %v3467_v47 = vmax.f32 %v3451_v11, 0.0  ;;  %v4943_v57 = vpop.f32.mrb[60].mxu1 }
 0x349   : > { %v4246_v50 = vpack.c.bf16 %v3469_v56, %v3468_v51  ;;  %v5047_v60 = vadd.f32 %v5046_v35, %v4943_v57  ;;  %v3411_v17 = vpop.f32.mrb[61].mxu1 }
 0x34a   : > { %v4241_v22 = vpack.c.bf16 %v3467_v47, %v3466_v23  ;;  %v5050_v21 = vadd.f32 %v6470_v42, %v3411_v17  ;;  %v4944_v46 = vpop.f32.mrb[62].mxu1 }
 0x34b   : > { %4270 = vst [vmem:[%s5410_s23 + $0x68] sm:$0xff] %v4246_v50   ;;  %v3456_v27 = vadd.f32 %v5047_v60, %v5427_v15  ;;  %v5053_v28 = vadd.f32 %v6476_v10, %v4944_v46  ;;  %v3414_v37 = vpop.f32.mrb[63].mxu1 }
 0x34c   : > { %4269 = vst [vmem:[%s5410_s23 + $0x60] sm:$0xff] %v4241_v22   ;;  %v3454_v52 = vadd.f32 %v5050_v21, %v5427_v15  ;;  %v5056_v2 = vadd.f32 %v6472_v18, %v3414_v37 }
 0x34d   : > { %v3457_v35 = vadd.f32 %v5053_v28, %v5427_v15  ;;  %v3472_v25 = vmax.f32 %v3456_v27, 0.0 }
 0x34e   : > { %v3455_v0 = vadd.f32 %v5056_v2, %v5427_v15  ;;  %v3470_v63 = vmax.f32 %v3454_v52, 0.0 }
 0x34f   : > { %v3473_v42 = vmax.f32 %v3457_v35, 0.0 }
 0x350   : > { %v3471_v32 = vmax.f32 %v3455_v0, 0.0 }
 0x351   : > { %v4256_v48 = vpack.c.bf16 %v3473_v42, %v3472_v25 }
 0x352   : > { %v4251_v39 = vpack.c.bf16 %v3471_v32, %v3470_v63 }
 0x353   : > { %4272 = vst [vmem:[%s5410_s23 + $0x78] sm:$0xff] %v4256_v48  }
 0x354   : > { %4271 = vst [vmem:[%s5410_s23 + $0x70] sm:$0xff] %v4251_v39  }
 0x355 PF: > { %s13_s14 = sadd.s32 1, %s5359_s14   ;;  %s6530_s12 = smov %s5355_s13 }
 0x356   : > { %p10_p5 = scmp.ge.s32.totalorder %s13_s14, 4   ;;  %s6531_s13 = smov %s6533_s15 }
 0x358   :  { %12 = sbr.rel (!%p10_p5) target bundleno = 2 (0x2), region = 147 }
 0x35f   :  { %3587 = vsyncmov [#allocation3] }
 0x362   :  { %s3588_s11 = vpop.sfrf %3587 }
 0x363   :  { %p4142_p6 = scmp.ne.s32.totalorder %s3588_s11, 0 }
 0x365   :  { %3592 = shalt.err (%p4142_p6)  }
 0x366   :  { %3594 = vsyncmov [#allocation3 + $0x1] }
 0x369   :  { %s3595_s16 = vpop.sfrf %3594 }
 0x36a   :  { %p4143_p7 = scmp.ne.s32.totalorder %s3595_s16, 0 }
 0x36c   :  { %3599 = shalt.err (%p4143_p7)  }

</bundles_post_ra>
